<compile_context>
chip_gen: v5e
topology: v5e:2x2
jax: 0.10.0
libtpu: 0.0.40
codegen_flags: <defaults>
</compile_context>

<pallas_src>
import jax
import jax.numpy as jnp
from jax.experimental import pallas as pl
from jax.experimental.pallas import tpu as pltpu

LAYER_SIZE = 200          # PyTorch hidden width
HIDDEN_PAD = 256          # 200 -> 256 (lane-dense)
END_PAD = 128             # 100 -> 128 (lane-dense)
NEG_SLOPE = 0.01          # nn.LeakyReLU default negative_slope


def _round_up(n, m):
    return (n + m - 1) // m * m


def _leaky_relu(v):
    return jnp.where(v > 0, v, NEG_SLOPE * v)


def _pick_batch_tile(batch):
    # Lane-dense tiles (multiple of 128): big enough to amortize the ~0.35us per-step
    # pipeline overhead, small enough to give >=2 "parallel" grid steps (v7x megacore)
    # once the batch allows it.
    if batch <= 256:
        return 128
    if batch <= 1024:
        return 256
    return 512


def _mlp_kernel(x_ref,
                w0_ref, b0_ref,
                w1_ref, b1_ref,
                w2_ref, b2_ref,
                we_ref, be_ref,
                wo_ref, bo_ref,
                o_ref):
    # Feature-major activations: h is [features, batch_tile]; weights are [out, in]
    # (PyTorch layout); biases are [out, 1] columns broadcasting along lanes.
    x = x_ref[...]

    h = jnp.dot(w0_ref[...], x, preferred_element_type=jnp.float32) + b0_ref[...]
    h = _leaky_relu(h)

    h = jnp.dot(w1_ref[...], h, preferred_element_type=jnp.float32) + b1_ref[...]
    h = _leaky_relu(h)

    h = jnp.dot(w2_ref[...], h, preferred_element_type=jnp.float32) + b2_ref[...]
    h = _leaky_relu(h)

    h = jnp.dot(we_ref[...], h, preferred_element_type=jnp.float32) + be_ref[...]
    h = _leaky_relu(h)

    # Final Linear(100 -> 1): VPU multiply + sublane reduce (XLU) instead of an N=1 MXU
    # matmul.  Result is a lane-dense (1, tile) row.
    out = jnp.sum(h * wo_ref[...], axis=0, keepdims=True) + bo_ref[...]
    o_ref[...] = out.astype(o_ref.dtype)


def pytorch_reg_forward(x, kparams):
    """x: [B, input_size] float32. kparams: padded kernel params (see prepare_params).
    Returns [B, 1] float32."""
    B, F = x.shape
    f_pad = kparams["w0"].shape[1]
    assert F <= f_pad, "x feature dim larger than prepared params"

    tile = _pick_batch_tile(B)
    b_pad = _round_up(B, tile)
    grid = (b_pad // tile,)

    # Transpose + zero-pad the input to feature-major [f_pad, b_pad] (single fused XLA op;
    # tiny compared to the kernel's work).
    x_t = jnp.zeros((f_pad, b_pad), jnp.float32).at[:F, :B].set(x.T.astype(jnp.float32))

    def const_spec(arr):
        # Weights / biases: full block with a constant index_map -> Pallas keeps the block
        # resident across grid steps instead of re-DMAing it.
        return pl.BlockSpec(arr.shape, lambda i: (0, 0))

    flops = 2 * b_pad * (f_pad * HIDDEN_PAD
                         + 2 * HIDDEN_PAD * HIDDEN_PAD
                         + HIDDEN_PAD * END_PAD
                         + END_PAD)
    bytes_accessed = 4 * (x_t.size + sum(int(v.size) for v in kparams.values()) + b_pad)

    out = pl.pallas_call(
        _mlp_kernel,
        out_shape=jax.ShapeDtypeStruct((1, b_pad), jnp.float32),
        grid_spec=pltpu.PrefetchScalarGridSpec(
            num_scalar_prefetch=0,
            grid=grid,
            in_specs=[
                pl.BlockSpec((f_pad, tile), lambda i: (0, i)),
                const_spec(kparams["w0"]), const_spec(kparams["b0"]),
                const_spec(kparams["w1"]), const_spec(kparams["b1"]),
                const_spec(kparams["w2"]), const_spec(kparams["b2"]),
                const_spec(kparams["we"]), const_spec(kparams["be"]),
                const_spec(kparams["wo"]), const_spec(kparams["bo"]),
            ],
            out_specs=pl.BlockSpec((1, tile), lambda i: (0, i)),
        ),
        compiler_params=pltpu.CompilerParams(
            dimension_semantics=("parallel",),
        ),
        cost_estimate=pl.CostEstimate(
            flops=int(flops), transcendentals=0, bytes_accessed=int(bytes_accessed)),
    )(x_t,
      kparams["w0"], kparams["b0"],
      kparams["w1"], kparams["b1"],
      kparams["w2"], kparams["b2"],
      kparams["we"], kparams["be"],
      kparams["wo"], kparams["bo"])

    # (1, b_pad) lane-dense row -> (B, 1)
    return out[0, :B][:, None]


def init_params(key, input_size):
    """PyTorch-layout params: W is [out_features, in_features], b is [out_features].
    Init mimics nn.Linear default: U(-1/sqrt(fan_in), 1/sqrt(fan_in))."""
    dims = [
        (LAYER_SIZE, input_size),        # linear0
        (LAYER_SIZE, LAYER_SIZE),        # common_block layer1
        (LAYER_SIZE, LAYER_SIZE),        # common_block layer2
        (LAYER_SIZE // 2, LAYER_SIZE),   # linear_end
        (1, LAYER_SIZE // 2),            # linear_out
    ]
    names = ["0", "1", "2", "e", "o"]
    params = {}
    for name, (fan_out, fan_in) in zip(names, dims):
        key, kw, kb = jax.random.split(key, 3)
        bound = float(fan_in) ** -0.5
        params[f"w{name}"] = jax.random.uniform(
            kw, (fan_out, fan_in), jnp.float32, minval=-bound, maxval=bound)
        params[f"b{name}"] = jax.random.uniform(
            kb, (fan_out,), jnp.float32, minval=-bound, maxval=bound)
    return params


def prepare_params(params, input_size):
    """Zero-pad PyTorch-layout params to lane-dense kernel shapes:
    hidden 200->256, end 100->128, input_size -> multiple of 8; biases as [out,1] columns;
    the final weight becomes a [END_PAD, 1] column for the VPU-reduce epilogue."""
    f_pad = _round_up(input_size, 8)

    def pad2(a, rows, cols):
        out = jnp.zeros((rows, cols), jnp.float32)
        return out.at[:a.shape[0], :a.shape[1]].set(a.astype(jnp.float32))

    return dict(
        w0=pad2(params["w0"], HIDDEN_PAD, f_pad),
        b0=pad2(params["b0"][:, None], HIDDEN_PAD, 1),
        w1=pad2(params["w1"], HIDDEN_PAD, HIDDEN_PAD),
        b1=pad2(params["b1"][:, None], HIDDEN_PAD, 1),
        w2=pad2(params["w2"], HIDDEN_PAD, HIDDEN_PAD),
        b2=pad2(params["b2"][:, None], HIDDEN_PAD, 1),
        we=pad2(params["we"], END_PAD, HIDDEN_PAD),
        be=pad2(params["be"][:, None], END_PAD, 1),
        wo=pad2(params["wo"].T, END_PAD, 1),     # per-feature weights as a column
        bo=pad2(params["bo"][:, None], 1, 1),
    )


def reference_forward(x, params):
    """Plain-JAX reference on the unpadded PyTorch-layout params."""
    h = _leaky_relu(x @ params["w0"].T + params["b0"])
    h = _leaky_relu(h @ params["w1"].T + params["b1"])
    h = _leaky_relu(h @ params["w2"].T + params["b2"])
    h = _leaky_relu(h @ params["we"].T + params["be"])
    return h @ params["wo"].T + params["bo"]


if __name__ == "__main__":
    key = jax.random.PRNGKey(0)
    key, kx, kp, kx2 = jax.random.split(key, 4)

    input_size = 6      # acrobot-style observation dimension
    batch = 256         # exercises a 2-step "parallel" grid (both v7x TensorCores)

    x = jax.random.normal(kx, (batch, input_size), dtype=jnp.float32)
    params = init_params(kp, input_size)
    kparams = prepare_params(params, input_size)

    fwd = jax.jit(pytorch_reg_forward)

    y = jax.block_until_ready(fwd(x, kparams))
    y_ref = reference_forward(x, params)
    assert y.shape == (batch, 1)
    assert jnp.allclose(y, y_ref, atol=1e-4, rtol=1e-4), "mismatch vs reference"

    # Ragged batch (not a multiple of the tile): exercises the zero-pad + slice path.
    x2 = jax.random.normal(kx2, (37, input_size), dtype=jnp.float32)
    y2 = jax.block_until_ready(fwd(x2, kparams))
    assert y2.shape == (37, 1)
    assert jnp.allclose(y2, reference_forward(x2, params), atol=1e-4, rtol=1e-4), \
        "mismatch vs reference (ragged batch)"

    print("KERNEL_OK")
</pallas_src>

<mosaic_0001>
module attributes {stable_mosaic.version = 11 : i64} {
  func.func @_mlp_kernel(%arg0: i32, %arg1: memref<8x128xf32, #tpu.memory_space<vmem>>, %arg2: memref<256x8xf32, #tpu.memory_space<vmem>>, %arg3: memref<256x1xf32, #tpu.memory_space<vmem>>, %arg4: memref<256x256xf32, #tpu.memory_space<vmem>>, %arg5: memref<256x1xf32, #tpu.memory_space<vmem>>, %arg6: memref<256x256xf32, #tpu.memory_space<vmem>>, %arg7: memref<256x1xf32, #tpu.memory_space<vmem>>, %arg8: memref<128x256xf32, #tpu.memory_space<vmem>>, %arg9: memref<128x1xf32, #tpu.memory_space<vmem>>, %arg10: memref<128x1xf32, #tpu.memory_space<vmem>>, %arg11: memref<1x1xf32, #tpu.memory_space<vmem>>, %arg12: memref<1x128xf32, #tpu.memory_space<vmem>>) attributes {dimension_semantics = [#tpu.dimension_semantics<parallel>], iteration_bounds = array<i64: 2>, scalar_prefetch = 0 : i64, scratch_operands = 0 : i64, tpu.core_type = #tpu.core_type<tc>, window_params = [{transform_indices = @transform_0, window_bounds = array<i64: 8, 128>}, {pipeline_mode = #tpu.pipeline_mode<synchronous>, transform_indices = @transform_1, window_bounds = array<i64: 256, 8>}, {pipeline_mode = #tpu.pipeline_mode<synchronous>, transform_indices = @transform_2, window_bounds = array<i64: 256, 1>}, {pipeline_mode = #tpu.pipeline_mode<synchronous>, transform_indices = @transform_3, window_bounds = array<i64: 256, 256>}, {pipeline_mode = #tpu.pipeline_mode<synchronous>, transform_indices = @transform_4, window_bounds = array<i64: 256, 1>}, {pipeline_mode = #tpu.pipeline_mode<synchronous>, transform_indices = @transform_5, window_bounds = array<i64: 256, 256>}, {pipeline_mode = #tpu.pipeline_mode<synchronous>, transform_indices = @transform_6, window_bounds = array<i64: 256, 1>}, {pipeline_mode = #tpu.pipeline_mode<synchronous>, transform_indices = @transform_7, window_bounds = array<i64: 128, 256>}, {pipeline_mode = #tpu.pipeline_mode<synchronous>, transform_indices = @transform_8, window_bounds = array<i64: 128, 1>}, {pipeline_mode = #tpu.pipeline_mode<synchronous>, transform_indices = @transform_9, window_bounds = array<i64: 128, 1>}, {pipeline_mode = #tpu.pipeline_mode<synchronous>, transform_indices = @transform_10, window_bounds = array<i64: 1, 1>}, {transform_indices = @transform_11, window_bounds = array<i64: 1, 128>}]} {
    %c0 = arith.constant 0 : index
    %c0_0 = arith.constant 0 : index
    %0 = vector.load %arg1[%c0, %c0_0] : memref<8x128xf32, #tpu.memory_space<vmem>>, vector<8x128xf32>
    %c0_1 = arith.constant 0 : index
    %c0_2 = arith.constant 0 : index
    %1 = vector.load %arg2[%c0_1, %c0_2] : memref<256x8xf32, #tpu.memory_space<vmem>>, vector<256x8xf32>
    %cst = arith.constant dense<0.000000e+00> : vector<256x128xf32>
    %2 = tpu.matmul %1, %0, %cst {dimension_numbers = #tpu.dot_dimension_numbers<[1], [0], [0], [1], [0, 0, 1, 1], [], []>} : vector<256x8xf32>, vector<8x128xf32>, vector<256x128xf32> -> vector<256x128xf32>
    %c0_3 = arith.constant 0 : index
    %c0_4 = arith.constant 0 : index
    %3 = vector.load %arg3[%c0_3, %c0_4] : memref<256x1xf32, #tpu.memory_space<vmem>>, vector<256x1xf32>
    %4 = vector.broadcast %3 : vector<256x1xf32> to vector<256x128xf32>
    %5 = arith.addf %2, %4 : vector<256x128xf32>
    %cst_5 = arith.constant 0.000000e+00 : f32
    %6 = vector.broadcast %cst_5 : f32 to vector<256x128xf32>
    %7 = arith.cmpf ogt, %5, %6 : vector<256x128xf32>
    %cst_6 = arith.constant 0.00999999977 : f32
    %8 = vector.broadcast %cst_6 : f32 to vector<256x128xf32>
    %9 = arith.mulf %8, %5 : vector<256x128xf32>
    %10 = arith.select %7, %5, %9 : vector<256x128xi1>, vector<256x128xf32>
    %c0_7 = arith.constant 0 : index
    %c0_8 = arith.constant 0 : index
    %11 = vector.load %arg4[%c0_7, %c0_8] : memref<256x256xf32, #tpu.memory_space<vmem>>, vector<256x256xf32>
    %cst_9 = arith.constant dense<0.000000e+00> : vector<256x128xf32>
    %12 = tpu.matmul %11, %10, %cst_9 {dimension_numbers = #tpu.dot_dimension_numbers<[1], [0], [0], [1], [0, 0, 1, 1], [], []>} : vector<256x256xf32>, vector<256x128xf32>, vector<256x128xf32> -> vector<256x128xf32>
    %c0_10 = arith.constant 0 : index
    %c0_11 = arith.constant 0 : index
    %13 = vector.load %arg5[%c0_10, %c0_11] : memref<256x1xf32, #tpu.memory_space<vmem>>, vector<256x1xf32>
    %14 = vector.broadcast %13 : vector<256x1xf32> to vector<256x128xf32>
    %15 = arith.addf %12, %14 : vector<256x128xf32>
    %cst_12 = arith.constant 0.000000e+00 : f32
    %16 = vector.broadcast %cst_12 : f32 to vector<256x128xf32>
    %17 = arith.cmpf ogt, %15, %16 : vector<256x128xf32>
    %cst_13 = arith.constant 0.00999999977 : f32
    %18 = vector.broadcast %cst_13 : f32 to vector<256x128xf32>
    %19 = arith.mulf %18, %15 : vector<256x128xf32>
    %20 = arith.select %17, %15, %19 : vector<256x128xi1>, vector<256x128xf32>
    %c0_14 = arith.constant 0 : index
    %c0_15 = arith.constant 0 : index
    %21 = vector.load %arg6[%c0_14, %c0_15] : memref<256x256xf32, #tpu.memory_space<vmem>>, vector<256x256xf32>
    %cst_16 = arith.constant dense<0.000000e+00> : vector<256x128xf32>
    %22 = tpu.matmul %21, %20, %cst_16 {dimension_numbers = #tpu.dot_dimension_numbers<[1], [0], [0], [1], [0, 0, 1, 1], [], []>} : vector<256x256xf32>, vector<256x128xf32>, vector<256x128xf32> -> vector<256x128xf32>
    %c0_17 = arith.constant 0 : index
    %c0_18 = arith.constant 0 : index
    %23 = vector.load %arg7[%c0_17, %c0_18] : memref<256x1xf32, #tpu.memory_space<vmem>>, vector<256x1xf32>
    %24 = vector.broadcast %23 : vector<256x1xf32> to vector<256x128xf32>
    %25 = arith.addf %22, %24 : vector<256x128xf32>
    %cst_19 = arith.constant 0.000000e+00 : f32
    %26 = vector.broadcast %cst_19 : f32 to vector<256x128xf32>
    %27 = arith.cmpf ogt, %25, %26 : vector<256x128xf32>
    %cst_20 = arith.constant 0.00999999977 : f32
    %28 = vector.broadcast %cst_20 : f32 to vector<256x128xf32>
    %29 = arith.mulf %28, %25 : vector<256x128xf32>
    %30 = arith.select %27, %25, %29 : vector<256x128xi1>, vector<256x128xf32>
    %c0_21 = arith.constant 0 : index
    %c0_22 = arith.constant 0 : index
    %31 = vector.load %arg8[%c0_21, %c0_22] : memref<128x256xf32, #tpu.memory_space<vmem>>, vector<128x256xf32>
    %cst_23 = arith.constant dense<0.000000e+00> : vector<128x128xf32>
    %32 = tpu.matmul %31, %30, %cst_23 {dimension_numbers = #tpu.dot_dimension_numbers<[1], [0], [0], [1], [0, 0, 1, 1], [], []>} : vector<128x256xf32>, vector<256x128xf32>, vector<128x128xf32> -> vector<128x128xf32>
    %c0_24 = arith.constant 0 : index
    %c0_25 = arith.constant 0 : index
    %33 = vector.load %arg9[%c0_24, %c0_25] : memref<128x1xf32, #tpu.memory_space<vmem>>, vector<128x1xf32>
    %34 = vector.broadcast %33 : vector<128x1xf32> to vector<128x128xf32>
    %35 = arith.addf %32, %34 : vector<128x128xf32>
    %cst_26 = arith.constant 0.000000e+00 : f32
    %36 = vector.broadcast %cst_26 : f32 to vector<128x128xf32>
    %37 = arith.cmpf ogt, %35, %36 : vector<128x128xf32>
    %cst_27 = arith.constant 0.00999999977 : f32
    %38 = vector.broadcast %cst_27 : f32 to vector<128x128xf32>
    %39 = arith.mulf %38, %35 : vector<128x128xf32>
    %40 = arith.select %37, %35, %39 : vector<128x128xi1>, vector<128x128xf32>
    %c0_28 = arith.constant 0 : index
    %c0_29 = arith.constant 0 : index
    %41 = vector.load %arg10[%c0_28, %c0_29] : memref<128x1xf32, #tpu.memory_space<vmem>>, vector<128x1xf32>
    %42 = vector.broadcast %41 : vector<128x1xf32> to vector<128x128xf32>
    %43 = arith.mulf %40, %42 : vector<128x128xf32>
    %cst_30 = arith.constant dense<0.000000e+00> : vector<128xf32>
    %44 = vector.multi_reduction <add>, %43, %cst_30 [0] : vector<128x128xf32> to vector<128xf32>
    %45 = vector.shape_cast %44 : vector<128xf32> to vector<1x128xf32>
    %c0_31 = arith.constant 0 : index
    %c0_32 = arith.constant 0 : index
    %46 = vector.load %arg11[%c0_31, %c0_32] : memref<1x1xf32, #tpu.memory_space<vmem>>, vector<1x1xf32>
    %47 = vector.broadcast %46 : vector<1x1xf32> to vector<1x128xf32>
    %48 = arith.addf %45, %47 : vector<1x128xf32>
    %c0_33 = arith.constant 0 : index
    %c0_34 = arith.constant 0 : index
    %49 = vector.load %arg12[%c0_33, %c0_34] : memref<1x128xf32, #tpu.memory_space<vmem>>, vector<1x128xf32>
    tpu.vector_store %arg12[%c0_33, %c0_34], %48 {strides = array<i32>} : memref<1x128xf32, #tpu.memory_space<vmem>>, vector<1x128xf32>,
    return
  }
  func.func @transform_0(%arg0: i32) -> (i32, i32) {
    %c0_i32 = arith.constant 0 : i32
    %c0_i32_0 = arith.constant 0 : i32
    return %c0_i32, %arg0 : i32, i32
  }
  func.func @transform_1(%arg0: i32) -> (i32, i32) {
    %c0_i32 = arith.constant 0 : i32
    %c0_i32_0 = arith.constant 0 : i32
    %c0_i32_1 = arith.constant 0 : i32
    return %c0_i32, %c0_i32_0 : i32, i32
  }
  func.func @transform_2(%arg0: i32) -> (i32, i32) {
    %c0_i32 = arith.constant 0 : i32
    %c0_i32_0 = arith.constant 0 : i32
    %c0_i32_1 = arith.constant 0 : i32
    return %c0_i32, %c0_i32_0 : i32, i32
  }
  func.func @transform_3(%arg0: i32) -> (i32, i32) {
    %c0_i32 = arith.constant 0 : i32
    %c0_i32_0 = arith.constant 0 : i32
    %c0_i32_1 = arith.constant 0 : i32
    return %c0_i32, %c0_i32_0 : i32, i32
  }
  func.func @transform_4(%arg0: i32) -> (i32, i32) {
    %c0_i32 = arith.constant 0 : i32
    %c0_i32_0 = arith.constant 0 : i32
    %c0_i32_1 = arith.constant 0 : i32
    return %c0_i32, %c0_i32_0 : i32, i32
  }
  func.func @transform_5(%arg0: i32) -> (i32, i32) {
    %c0_i32 = arith.constant 0 : i32
    %c0_i32_0 = arith.constant 0 : i32
    %c0_i32_1 = arith.constant 0 : i32
    return %c0_i32, %c0_i32_0 : i32, i32
  }
  func.func @transform_6(%arg0: i32) -> (i32, i32) {
    %c0_i32 = arith.constant 0 : i32
    %c0_i32_0 = arith.constant 0 : i32
    %c0_i32_1 = arith.constant 0 : i32
    return %c0_i32, %c0_i32_0 : i32, i32
  }
  func.func @transform_7(%arg0: i32) -> (i32, i32) {
    %c0_i32 = arith.constant 0 : i32
    %c0_i32_0 = arith.constant 0 : i32
    %c0_i32_1 = arith.constant 0 : i32
    return %c0_i32, %c0_i32_0 : i32, i32
  }
  func.func @transform_8(%arg0: i32) -> (i32, i32) {
    %c0_i32 = arith.constant 0 : i32
    %c0_i32_0 = arith.constant 0 : i32
    %c0_i32_1 = arith.constant 0 : i32
    return %c0_i32, %c0_i32_0 : i32, i32
  }
  func.func @transform_9(%arg0: i32) -> (i32, i32) {
    %c0_i32 = arith.constant 0 : i32
    %c0_i32_0 = arith.constant 0 : i32
    %c0_i32_1 = arith.constant 0 : i32
    return %c0_i32, %c0_i32_0 : i32, i32
  }
  func.func @transform_10(%arg0: i32) -> (i32, i32) {
    %c0_i32 = arith.constant 0 : i32
    %c0_i32_0 = arith.constant 0 : i32
    %c0_i32_1 = arith.constant 0 : i32
    return %c0_i32, %c0_i32_0 : i32, i32
  }
  func.func @transform_11(%arg0: i32) -> (i32, i32) {
    %c0_i32 = arith.constant 0 : i32
    %c0_i32_0 = arith.constant 0 : i32
    return %c0_i32, %arg0 : i32, i32
  }
}

</mosaic_0001>

<bundles_post_ra>
// kernel: pytorch_reg_forward.1
= control target key start
LH: loop header
LB: loop body
LE: loop exit
PB: predicated region body
PF: predicated region fallthrough
CT: control target
= control target key end

     0   :  { %s4423_s0 = inlined_call_operand.vmem [shape: f32[8,256], index: 0, kind: input, shape index: {}]   ;;  %s4424_s1 = inlined_call_operand.vmem [shape: f32[256,8], index: 1, kind: input, shape index: {}]   ;;  %s4425_s2 = inlined_call_operand.vmem [shape: f32[256,1], index: 2, kind: input, shape index: {}]   ;;  %s4426_s3 = inlined_call_operand.vmem [shape: f32[256,256], index: 3, kind: input, shape index: {}]   ;;  %s4427_s4 = inlined_call_operand.vmem [shape: f32[256,1], index: 4, kind: input, shape index: {}]   ;;  %s4428_s5 = inlined_call_operand.vmem [shape: f32[256,256], index: 5, kind: input, shape index: {}]   ;;  %s4429_s6 = inlined_call_operand.vmem [shape: f32[256,1], index: 6, kind: input, shape index: {}]   ;;  %s4430_s7 = inlined_call_operand.vmem [shape: f32[128,256], index: 7, kind: input, shape index: {}]   ;;  %s4431_s8 = inlined_call_operand.vmem [shape: f32[128,1], index: 8, kind: input, shape index: {}]   ;;  %s4432_s9 = inlined_call_operand.vmem [shape: f32[128,1], index: 9, kind: input, shape index: {}]   ;;  %s4433_s10 = inlined_call_operand.<no memory space> [shape: f32[1,1], index: 10, kind: input, shape index: {}]   ;;  %s4434_s11 = inlined_call_operand.hbm [shape: f32[1,256], index: 11, kind: output, shape index: {}]  }
   0x1   :  { %v16_v0 = vstv %s4433_s10 }
   0x2   :  { %17 = vst [vmem:[#allocation2] sm:$0x1] %v16_v0 }
   0x3   :  { %18 = vsyncpa [#allocation4], 0 }
   0x4   :  { %20 = vsyncpa [#allocation4 + $0x1], 0  ;;  %s2829_s19 = smov 0   ;;  %s2831_s20 = smov 0  }
   0x5   :  { %s2833_s21 = smov 0   ;;  %s2835_s22 = smov 0  }
   0x6 LB: > { %s2850_s10 = sadd.s32 4294967295, %s2763_s22   ;;  %s2586_s23 = sadd.s32 4294967294, %s2763_s22   ;;  %s2763_s22 = sphi %s2835_s22, %s4454_s22   ;;  %s2759_s21 = sphi %s2833_s21, %s4453_s21   ;;  %s2755_s20 = sphi %s2831_s20, %s4452_s20   ;;  %s2751_s19 = sphi %s2829_s19, %s4451_s19  }
   0x7   : > { %s2854_s24 = sadd.s32 1, %s2763_s22   ;;  %s269_s25 = sadd.s32 1, %s2759_s21 }
   0x8   : > { %s266_s26 = ssub.s32 %s2763_s22, %s2854_s24  ;;  %p279_p0 = scmp.ne.s32.totalorder %s2759_s21, %s2755_s20 }
   0x9   : > { %p267_p1 = scmp.eq.s32.totalorder %s266_s26, 0  ;;  %p280_p2 = scmp.eq.s32.totalorder %s2850_s10, 1 }
   0xa   : > { %p285_p3 = scmp.ne.s32.totalorder %s2755_s20, %s2751_s19  ;;  %p286_p4 = scmp.eq.s32.totalorder %s2586_s23, 1 }
   0xb   : > { %s2865_s27 = scalar_select %p267_p1, %s2759_s21, %s269_s25  }
   0xc   : > { %p2867_p5 = por %p280_p2, %p279_p0  ;;  %p2871_p6 = por %p286_p4, %p285_p3 }
   0xd   : > { %p2589_p7 = scmp.ge.s32.totalorder %s2763_s22, 1  ;;  %p341_p8 = scmp.lt.s32.totalorder %s2763_s22, 3 }
   0xf   : > { %p342_p9 = pnand %p2589_p7, %p341_p8 }
  0x11   : > { %345 = sbr.rel (%p342_p9) target bundleno = 1409 (0x581), region = 64 }
  0x16   : > { %v447_v1 = vld [vmem:[%s4425_s2 + $0xf8] sm:$0xff]  ;;  %v430_v3 = vld [vmem:[%s4425_s2 + $0x70] sm:$0xff]  ;;  %p379_p10 = scmp.lt.s32.totalorder %s2850_s10, 1  ;;  %v2765_v4 = vmov 0   ;;  %v384_v5 = vld [vmem:[%s4424_s1] sm:$0xff]  ;;  %vm608_vm0 = vcmask 64512  }
  0x17   : > { %v431_v2 = vld [vmem:[%s4425_s2 + $0x78] sm:$0xff]  ;;  %2700 = vset.pattern.permute.xlu2 %v2765_v4  ;;  %2699 = vset.pattern.permute.xlu1 %v2765_v4  ;;  %v402_v6 = vld [vmem:[%s4424_s1 + $0x90] sm:$0xff]  ;;  %v445_v8 = vld [vmem:[%s4425_s2 + $0xe8] sm:$0xff]  ;;  %s2721_s23 = scalar_lea.hbm %s4434_s11, 2 }
  0x18   : > { %2698 = vset.pattern.permute.xlu0 %v2765_v4  ;;  %525 = vperm.xlu1 %2699, %v431_v2   ;;  %s380_s17 = scalar_select %p379_p10, %s2850_s10, 1  ;;  %v446_v9 = vld [vmem:[%s4425_s2 + $0xf0] sm:$0xff]  ;;  %v444_v10 = vld [vmem:[%s4425_s2 + $0xe0] sm:$0xff]  ;;  %v385_v11 = vld [vmem:[%s4424_s1 + $0x8] sm:$0xff] }
  0x19   : > { %605 = vperm.xlu0 %2698, %v447_v1   ;;  %520 = vperm.xlu2 %2700, %v430_v3   ;;  %v403_v12 = vld [vmem:[%s4424_s1 + $0x98] sm:$0xff]  ;;  %v429_v14 = vld [vmem:[%s4425_s2 + $0x68] sm:$0xff]  ;;  %v428_v15 = vld [vmem:[%s4425_s2 + $0x60] sm:$0xff] }
  0x1a   : > { %s2590_s18 = sshll.u32 %s380_s17, 3  ;;  %v443_v13 = vld [vmem:[%s4425_s2 + $0xd8] sm:$0xff]  ;;  %v386_v16 = vld [vmem:[%s4424_s1 + $0x10] sm:$0xff]  ;;  %v404_v17 = vld [vmem:[%s4424_s1 + $0xa0] sm:$0xff] }
  0x1b   : > { %s382_s26 = scalar_lea.vmem %s4423_s0, %s2590_s18  ;;  %v427_v18 = vld [vmem:[%s4425_s2 + $0x58] sm:$0xff]  ;;  %v442_v19 = vld [vmem:[%s4425_s2 + $0xd0] sm:$0xff]  ;;  %v441_v20 = vld [vmem:[%s4425_s2 + $0xc8] sm:$0xff]  ;;  %s377_s18 = sand.u32 1, %s2755_s20  }
  0x1c   : > { %v383_v7 = vld [vmem:[%s382_s26] sm:$0xff]  ;;  %v387_v21 = vld [vmem:[%s4424_s1 + $0x18] sm:$0xff]  ;;  %v405_v22 = vld [vmem:[%s4424_s1 + $0xa8] sm:$0xff]  ;;  %s2527_s26 = scalar_lea.hbm %s4434_s11, %s2850_s10  ;;  %s378_s30 = scalar_lea.vmem [#allocation3], %s377_s18 }
  0x1d   : > { %720 = vmatpush.msra.mxu0 %v383_v7  ;;  %2625 = vmatpush.msra.mxu3 %v383_v7  ;;  %v440_v23 = vld [vmem:[%s4425_s2 + $0xc0] sm:$0xff]  ;;  %v426_v24 = vld [vmem:[%s4425_s2 + $0x50] sm:$0xff]  ;;  %v425_v25 = vld [vmem:[%s4425_s2 + $0x48] sm:$0xff]  ;;  %s2529_s12 = sshll.u32 %s378_s30, 4  ;;  %s2531_s13 = sshll.u32 %s2527_s26, 4  ;;  %s2530_s12 = int_to_ptr.vmem [resolvable:$true] %s2529_s12  ;;  %s2532_s13 = int_to_ptr.hbm [resolvable:$true] %s2531_s13 }
  0x1e   : > { %2591 = vmatmul.msk.f32.vlgmr.msra.gmra.mxu0 %vm608_vm0, %v384_v5  ;;  %2609 = vmatmul.msk.f32.vlgmr.msra.gmra.mxu3 %vm608_vm0, %v402_v6  ;;  %v388_v26 = vld [vmem:[%s4424_s1 + $0x20] sm:$0xff]  ;;  %v406_v27 = vld [vmem:[%s4424_s1 + $0xb0] sm:$0xff]  ;;  %v439_v29 = vld [vmem:[%s4425_s2 + $0xb8] sm:$0xff]  ;;  %s2519_s14 = scalar_lea.sflag [#allocation4], %s377_s18  ;;  %s2715_s15 = sshra.s32 %s2532_s13, 4  ;;  %s2716_s15 = int_to_ptr.hbm [resolvable:$true] %s2715_s15 }
  0x1f   : > { %v424_v28 = vld [vmem:[%s4425_s2 + $0x40] sm:$0xff]  ;;  %v438_v30 = vld [vmem:[%s4425_s2 + $0xb0] sm:$0xff]  ;;  %v389_v31 = vld [vmem:[%s4424_s1 + $0x28] sm:$0xff]  ;;  %s2717_s16 = scalar_lea.hbm %s2716_s15, 1  ;;  %p2722_p0 = scmp.lt.s32.totalorder %s2716_s15, %s4434_s11 }
  0x20   : > { %595 = vperm.xlu1 %2699, %v445_v8   ;;  %v407_v32 = vld [vmem:[%s4424_s1 + $0xb8] sm:$0xff]  ;;  %v437_v33 = vld [vmem:[%s4425_s2 + $0xa8] sm:$0xff]  ;;  %v422_v35 = vld [vmem:[%s4425_s2 + $0x30] sm:$0xff]  ;;  %p2718_p11 = scmp.ne.s32.totalorder %s2716_s15, %s2717_s16  ;;  %p2723_p1 = scmp.lt.s32.totalorder %s2721_s23, %s2717_s16 }
  0x21   : > { %600 = vperm.xlu0 %2698, %v446_v9   ;;  %590 = vperm.xlu2 %2700, %v444_v10   ;;  %v423_v34 = vld [vmem:[%s4425_s2 + $0x38] sm:$0xff]  ;;  %v390_v36 = vld [vmem:[%s4424_s1 + $0x30] sm:$0xff]  ;;  %v408_v37 = vld [vmem:[%s4424_s1 + $0xc0] sm:$0xff] }
  0x22   : > { %v421_v38 = vld [vmem:[%s4425_s2 + $0x28] sm:$0xff]  ;;  %v436_v39 = vld [vmem:[%s4425_s2 + $0xa0] sm:$0xff]  ;;  %v435_v40 = vld [vmem:[%s4425_s2 + $0x98] sm:$0xff]  ;;  %p2719_p12 = pnand %p2718_p11, %p2867_p5  ;;  %p2724_p2 = por %p2723_p1, %p2722_p0 }
  0x23   : > { %v391_v41 = vld [vmem:[%s4424_s1 + $0x38] sm:$0xff]  ;;  %v409_v42 = vld [vmem:[%s4424_s1 + $0xc8] sm:$0xff]  ;;  %v434_v43 = vld [vmem:[%s4425_s2 + $0x90] sm:$0xff] }
  0x24   : > { %v420_v44 = vld [vmem:[%s4425_s2 + $0x20] sm:$0xff]  ;;  %v419_v45 = vld [vmem:[%s4425_s2 + $0x18] sm:$0xff]  ;;  %v410_v47 = vld [vmem:[%s4424_s1 + $0xd0] sm:$0xff]  ;;  %p2720_p13 = pneg %p2719_p12 }
  0x25   : > { %v392_v46 = vld [vmem:[%s4424_s1 + $0x40] sm:$0xff]  ;;  %v418_v48 = vld [vmem:[%s4425_s2 + $0x10] sm:$0xff]  ;;  %v433_v49 = vld [vmem:[%s4425_s2 + $0x88] sm:$0xff] }
  0x26   : > { %2592 = vmatmul.msk.f32.gmra.mxu0 %vm608_vm0, %v385_v11  ;;  %2610 = vmatmul.msk.f32.gmra.mxu3 %vm608_vm0, %v403_v12  ;;  %v432_v50 = vld [vmem:[%s4425_s2 + $0x80] sm:$0xff]  ;;  %v393_v51 = vld [vmem:[%s4424_s1 + $0x48] sm:$0xff]  ;;  %v411_v52 = vld [vmem:[%s4424_s1 + $0xd8] sm:$0xff]  ;;  %p2725_p3 = pnand %p2724_p2, %p2720_p13 }
  0x27   : > { %v416_v53 = vld [vmem:[%s4425_s2] sm:$0xff]  ;;  %v993_v54 = vld [vmem:[%s4427_s4 + $0x78] sm:$0xff]  ;;  %v417_v55 = vld [vmem:[%s4425_s2 + $0x8] sm:$0xff] }
  0x28   : > { %585 = vperm.xlu1 %2699, %v443_v13   ;;  %v394_v56 = vld [vmem:[%s4424_s1 + $0x50] sm:$0xff]  ;;  %v412_v57 = vld [vmem:[%s4424_s1 + $0xe0] sm:$0xff]  ;;  %v991_v58 = vld [vmem:[%s4427_s4 + $0x68] sm:$0xff] }
  0x29   : > { %515 = vperm.xlu0 %2698, %v429_v14   ;;  %510 = vperm.xlu2 %2700, %v428_v15   ;;  %v990_v59 = vld [vmem:[%s4427_s4 + $0x60] sm:$0xff]  ;;  %v992_v60 = vld [vmem:[%s4427_s4 + $0x70] sm:$0xff]  ;;  %v395_v61 = vld [vmem:[%s4424_s1 + $0x58] sm:$0xff] }
  0x2a   : > { %v413_v62 = vld [vmem:[%s4424_s1 + $0xe8] sm:$0xff]  ;;  %v1009_v63 = vld [vmem:[%s4427_s4 + $0xf8] sm:$0xff]  ;;  %v988_v0 = vld [vmem:[%s4427_s4 + $0x50] sm:$0xff] }
  0x2b   : > { %v989_v1 = vld [vmem:[%s4427_s4 + $0x58] sm:$0xff]  ;;  %v396_v2 = vld [vmem:[%s4424_s1 + $0x60] sm:$0xff]  ;;  %v414_v3 = vld [vmem:[%s4424_s1 + $0xf0] sm:$0xff] }
  0x2c   : > { %v987_v4 = vld [vmem:[%s4427_s4 + $0x48] sm:$0xff]  ;;  %v1008_v6 = vld [vmem:[%s4427_s4 + $0xf0] sm:$0xff]  ;;  %v415_v8 = vld [vmem:[%s4424_s1 + $0xf8] sm:$0xff] }
  0x2d   : > { %v1007_v5 = vld [vmem:[%s4427_s4 + $0xe8] sm:$0xff]  ;;  %v1006_v9 = vld [vmem:[%s4427_s4 + $0xe0] sm:$0xff]  ;;  %v985_v10 = vld [vmem:[%s4427_s4 + $0x38] sm:$0xff] }
  0x2e   : > { %2593 = vmatmul.msk.f32.gmra.mxu0 %vm608_vm0, %v386_v16  ;;  %2611 = vmatmul.msk.f32.gmra.mxu3 %vm608_vm0, %v404_v17  ;;  %v397_v7 = vld [vmem:[%s4424_s1 + $0x68] sm:$0xff]  ;;  %v986_v11 = vld [vmem:[%s4427_s4 + $0x40] sm:$0xff]  ;;  %v398_v12 = vld [vmem:[%s4424_s1 + $0x70] sm:$0xff] }
  0x2f   : > { %v984_v13 = vld [vmem:[%s4427_s4 + $0x30] sm:$0xff]  ;;  %v1005_v15 = vld [vmem:[%s4427_s4 + $0xd8] sm:$0xff]  ;;  %v1003_v17 = vld [vmem:[%s4427_s4 + $0xc8] sm:$0xff] }
  0x30   : > { %505 = vperm.xlu1 %2699, %v427_v18   ;;  %v1004_v14 = vld [vmem:[%s4427_s4 + $0xd0] sm:$0xff]  ;;  %v399_v16 = vld [vmem:[%s4424_s1 + $0x78] sm:$0xff]  ;;  %v982_v18 = vld [vmem:[%s4427_s4 + $0x20] sm:$0xff] }
  0x31   : > { %580 = vperm.xlu0 %2698, %v442_v19   ;;  %575 = vperm.xlu2 %2700, %v441_v20   ;;  %v983_v19 = vld [vmem:[%s4427_s4 + $0x28] sm:$0xff]  ;;  %v400_v20 = vld [vmem:[%s4424_s1 + $0x80] sm:$0xff] }
  0x36   : > { %2594 = vmatmul.msk.f32.gmra.mxu0 %vm608_vm0, %v387_v21  ;;  %2612 = vmatmul.msk.f32.gmra.mxu3 %vm608_vm0, %v405_v22  ;;  %v981_v22 = vld [vmem:[%s4427_s4 + $0x18] sm:$0xff] }
  0x38   : > { %570 = vperm.xlu1 %2699, %v440_v23   ;;  %v1001_v23 = vld [vmem:[%s4427_s4 + $0xb8] sm:$0xff] }
  0x39   : > { %500 = vperm.xlu0 %2698, %v426_v24   ;;  %495 = vperm.xlu2 %2700, %v425_v25   ;;  %v1002_v24 = vld [vmem:[%s4427_s4 + $0xc0] sm:$0xff] }
  0x3e   : > { %2595 = vmatmul.msk.f32.gmra.mxu0 %vm608_vm0, %v388_v26  ;;  %2613 = vmatmul.msk.f32.gmra.mxu3 %vm608_vm0, %v406_v27  ;;  %v401_v26 = vld [vmem:[%s4424_s1 + $0x88] sm:$0xff] }
  0x40   : > { %490 = vperm.xlu1 %2699, %v424_v28   ;;  %v1000_v28 = vld [vmem:[%s4427_s4 + $0xb0] sm:$0xff] }
  0x41   : > { %565 = vperm.xlu0 %2698, %v439_v29   ;;  %560 = vperm.xlu2 %2700, %v438_v30   ;;  %v979_v29 = vld [vmem:[%s4427_s4 + $0x8] sm:$0xff]  ;;  %v980_v30 = vld [vmem:[%s4427_s4 + $0x10] sm:$0xff] }
  0x46   : > { %2596 = vmatmul.msk.f32.gmra.mxu0 %vm608_vm0, %v389_v31  ;;  %2614 = vmatmul.msk.f32.gmra.mxu3 %vm608_vm0, %v407_v32 }
  0x48   : > { %555 = vperm.xlu1 %2699, %v437_v33   ;;  %v978_v33 = vld [vmem:[%s4427_s4] sm:$0xff] }
  0x49   : > { %485 = vperm.xlu0 %2698, %v423_v34   ;;  %480 = vperm.xlu2 %2700, %v422_v35   ;;  %v998_v34 = vld [vmem:[%s4427_s4 + $0xa0] sm:$0xff]  ;;  %v999_v35 = vld [vmem:[%s4427_s4 + $0xa8] sm:$0xff] }
  0x4e   : > { %2597 = vmatmul.msk.f32.gmra.mxu0 %vm608_vm0, %v390_v36  ;;  %2615 = vmatmul.msk.f32.gmra.mxu3 %vm608_vm0, %v408_v37 }
  0x50   : > { %475 = vperm.xlu1 %2699, %v421_v38   ;;  %v996_v38 = vld [vmem:[%s4427_s4 + $0x90] sm:$0xff] }
  0x51   : > { %550 = vperm.xlu0 %2698, %v436_v39   ;;  %545 = vperm.xlu2 %2700, %v435_v40   ;;  %v995_v39 = vld [vmem:[%s4427_s4 + $0x88] sm:$0xff]  ;;  %v997_v40 = vld [vmem:[%s4427_s4 + $0x98] sm:$0xff] }
  0x56   : > { %2598 = vmatmul.msk.f32.gmra.mxu0 %vm608_vm0, %v391_v41  ;;  %2616 = vmatmul.msk.f32.gmra.mxu3 %vm608_vm0, %v409_v42 }
  0x58   : > { %540 = vperm.xlu1 %2699, %v434_v43   ;;  %v1556_v43 = vld [vmem:[%s4429_s6] sm:$0xff] }
  0x59   : > { %470 = vperm.xlu0 %2698, %v420_v44   ;;  %465 = vperm.xlu2 %2700, %v419_v45   ;;  %v1557_v44 = vld [vmem:[%s4429_s6 + $0x8] sm:$0xff]  ;;  %v994_v45 = vld [vmem:[%s4427_s4 + $0x80] sm:$0xff] }
  0x5e   : > { %2599 = vmatmul.msk.f32.gmra.mxu0 %vm608_vm0, %v392_v46  ;;  %2617 = vmatmul.msk.f32.gmra.mxu3 %vm608_vm0, %v410_v47 }
  0x60   : > { %460 = vperm.xlu1 %2699, %v418_v48   ;;  %v1559_v48 = vld [vmem:[%s4429_s6 + $0x18] sm:$0xff] }
  0x61   : > { %535 = vperm.xlu0 %2698, %v433_v49   ;;  %530 = vperm.xlu2 %2700, %v432_v50   ;;  %v1560_v49 = vld [vmem:[%s4429_s6 + $0x20] sm:$0xff]  ;;  %v1558_v50 = vld [vmem:[%s4429_s6 + $0x10] sm:$0xff] }
  0x66   : > { %2600 = vmatmul.msk.f32.gmra.mxu0 %vm608_vm0, %v393_v51  ;;  %2618 = vmatmul.msk.f32.gmra.mxu3 %vm608_vm0, %v411_v52 }
  0x68   : > { %450 = vperm.xlu1 %2699, %v416_v53  }
  0x69   : > { %1087 = vperm.xlu2 %2700, %v993_v54   ;;  %455 = vperm.xlu0 %2698, %v417_v55  }
  0x6e   : > { %2601 = vmatmul.msk.f32.gmra.mxu0 %vm608_vm0, %v394_v56  ;;  %2619 = vmatmul.msk.f32.gmra.mxu3 %vm608_vm0, %v412_v57  ;;  %v1562_v56 = vld [vmem:[%s4429_s6 + $0x30] sm:$0xff]  ;;  %v1563_v57 = vld [vmem:[%s4429_s6 + $0x38] sm:$0xff] }
  0x70   : > { %1077 = vperm.xlu1 %2699, %v991_v58   ;;  %v1561_v58 = vld [vmem:[%s4429_s6 + $0x28] sm:$0xff] }
  0x71   : > { %1072 = vperm.xlu2 %2700, %v990_v59   ;;  %1082 = vperm.xlu0 %2698, %v992_v60  }
  0x73   : > { %v3245_v54 = vpop.permute.xlu2 %520 }
  0x76   : > { %2602 = vmatmul.msk.f32.gmra.mxu0 %vm608_vm0, %v395_v61  ;;  %2620 = vmatmul.msk.f32.gmra.mxu3 %vm608_vm0, %v413_v62 }
  0x78   : > { %1167 = vperm.xlu1 %2699, %v1009_v63  }
  0x79   : > { %1062 = vperm.xlu2 %2700, %v988_v0   ;;  %1067 = vperm.xlu0 %2698, %v989_v1   ;;  %v1586_v0 = vld [vmem:[%s4429_s6 + $0xf0] sm:$0xff]  ;;  %v1571_v1 = vld [vmem:[%s4429_s6 + $0x78] sm:$0xff] }
  0x7b   : > { %v3266_v63 = vpop.permute.xlu2 %590 }
  0x7e   : > { %2603 = vmatmul.msk.f32.gmra.mxu0 %vm608_vm0, %v396_v2  ;;  %2621 = vmatmul.msk.f32.gmra.mxu3 %vm608_vm0, %v414_v3  ;;  %v1587_v2 = vld [vmem:[%s4429_s6 + $0xf8] sm:$0xff] }
  0x80   : > { %1057 = vperm.xlu1 %2699, %v987_v4  }
  0x81   : > { %1157 = vperm.xlu2 %2700, %v1007_v5   ;;  %1162 = vperm.xlu0 %2698, %v1008_v6  }
  0x86   : > { %2604 = vmatmul.msk.f32.gmra.mxu0 %vm608_vm0, %v397_v7  ;;  %2622 = vmatmul.msk.f32.gmra.mxu3 %vm608_vm0, %v415_v8  ;;  %v1570_v7 = vld [vmem:[%s4429_s6 + $0x70] sm:$0xff]  ;;  %v1584_v8 = vld [vmem:[%s4429_s6 + $0xe0] sm:$0xff] }
  0x88   : > { %1152 = vperm.xlu1 %2699, %v1006_v9   ;;  %v1585_v9 = vld [vmem:[%s4429_s6 + $0xe8] sm:$0xff] }
  0x89   : > { %1047 = vperm.xlu2 %2700, %v985_v10   ;;  %1052 = vperm.xlu0 %2698, %v986_v11   ;;  %v3294_v10 = vpop.permute.xlu2 %510 }
  0x8a   : > { %v3241_v52 = vpop.permute.xlu1 %525 }
  0x8b   : > { %v3239_v51 = vpop.permute.xlu0 %605 }
  0x8e   : > { %2605 = vmatmul.msk.f32.gmra.mxu0 %vm608_vm0, %v398_v12 }
  0x90   : > { %1042 = vperm.xlu1 %2699, %v984_v13  }
  0x91   : > { %1142 = vperm.xlu2 %2700, %v1004_v14   ;;  %1147 = vperm.xlu0 %2698, %v1005_v15   ;;  %v1583_v14 = vld [vmem:[%s4429_s6 + $0xd8] sm:$0xff]  ;;  %v1568_v15 = vld [vmem:[%s4429_s6 + $0x60] sm:$0xff] }
  0x92   : > { %v3262_v61 = vpop.permute.xlu1 %595 }
  0x93   : > { %v3258_v59 = vpop.permute.xlu0 %600 }
  0x96   : > { %2606 = vmatmul.msk.f32.gmra.mxu0 %vm608_vm0, %v399_v16  ;;  %v1569_v16 = vld [vmem:[%s4429_s6 + $0x68] sm:$0xff] }
  0x98   : > { %1137 = vperm.xlu1 %2699, %v1003_v17  }
  0x99   : > { %1032 = vperm.xlu2 %2700, %v982_v18   ;;  %1037 = vperm.xlu0 %2698, %v983_v19   ;;  %v3313_v18 = vpop.permute.xlu2 %575 }
  0x9a   : > { %v3283_v6 = vpop.permute.xlu1 %585 }
  0x9b   : > { %v3158_v21 = vpop.f32.mrf.mxu0  ;;  %v3279_v4 = vpop.permute.xlu0 %515 }
  0x9e   : > { %2607 = vmatmul.msk.f32.gmra.mxu0 %vm608_vm0, %v400_v20 }
  0xa0   : > { %1027 = vperm.xlu1 %2699, %v981_v22   ;;  %v1567_v22 = vld [vmem:[%s4429_s6 + $0x58] sm:$0xff] }
  0xa1   : > { %1127 = vperm.xlu2 %2700, %v1001_v23   ;;  %1132 = vperm.xlu0 %2698, %v1002_v24   ;;  %v3170_v25 = vpop.f32.mrf.mxu3  ;;  %v1581_v23 = vld [vmem:[%s4429_s6 + $0xc8] sm:$0xff]  ;;  %v1582_v24 = vld [vmem:[%s4429_s6 + $0xd0] sm:$0xff] }
  0xa2   : > { %v3311_v17 = vpop.permute.xlu1 %505 }
  0xa3   : > { %v3175_v27 = vpop.f32.mrf.mxu0  ;;  %v3300_v13 = vpop.permute.xlu0 %580 }
  0xa6   : > { %2608 = vmatmul.msk.f32.gmra.mxu0 %vm608_vm0, %v401_v26 }
  0xa8   : > { %1122 = vperm.xlu1 %2699, %v1000_v28  }
  0xa9   : > { %1017 = vperm.xlu2 %2700, %v979_v29   ;;  %1022 = vperm.xlu0 %2698, %v980_v30   ;;  %v3187_v31 = vpop.f32.mrf.mxu3  ;;  %v3330_v30 = vpop.permute.xlu2 %495 }
  0xaa   : > { %v3328_v28 = vpop.permute.xlu1 %570 }
  0xab   : > { %v3189_v32 = vpop.f32.mrf.mxu0  ;;  %v3326_v26 = vpop.permute.xlu0 %500 }
  0xb0   : > { %1012 = vperm.xlu1 %2699, %v978_v33  }
  0xb1   : > { %1112 = vperm.xlu2 %2700, %v998_v34   ;;  %1117 = vperm.xlu0 %2698, %v999_v35   ;;  %v3200_v36 = vpop.f32.mrf.mxu3  ;;  %v1580_v34 = vld [vmem:[%s4429_s6 + $0xc0] sm:$0xff]  ;;  %v1565_v35 = vld [vmem:[%s4429_s6 + $0x48] sm:$0xff] }
  0xb3   : > { %v3202_v37 = vpop.f32.mrf.mxu0 }
  0xb8   : > { %1102 = vperm.xlu1 %2699, %v996_v38   ;;  %v1566_v38 = vld [vmem:[%s4429_s6 + $0x50] sm:$0xff] }
  0xb9   : > { %1097 = vperm.xlu2 %2700, %v995_v39   ;;  %1107 = vperm.xlu0 %2698, %v997_v40   ;;  %v3213_v41 = vpop.f32.mrf.mxu3  ;;  %v3343_v39 = vpop.permute.xlu0 %565 }
  0xbb   : > { %v3215_v42 = vpop.f32.mrf.mxu0 }
  0xc0   : > { %1590 = vperm.xlu1 %2699, %v1556_v43   ;;  %v3345_v43 = vpop.permute.xlu1 %490 }
  0xc1   : > { %1595 = vperm.xlu2 %2700, %v1557_v44   ;;  %1092 = vperm.xlu0 %2698, %v994_v45   ;;  %v3226_v46 = vpop.f32.mrf.mxu3  ;;  %v3349_v45 = vpop.permute.xlu2 %560 }
  0xc3   : > { %v3228_v47 = vpop.f32.mrf.mxu0 }
  0xc8   : > { %1605 = vperm.xlu1 %2699, %v1559_v48   ;;  %v1564_v48 = vld [vmem:[%s4429_s6 + $0x40] sm:$0xff] }
  0xc9   : > { %1610 = vperm.xlu2 %2700, %v1560_v49   ;;  %1600 = vperm.xlu0 %2698, %v1558_v50   ;;  %v3243_v53 = vpop.f32.mrf.mxu3  ;;  %v1578_v49 = vld [vmem:[%s4429_s6 + $0xb0] sm:$0xff]  ;;  %v1579_v50 = vld [vmem:[%s4429_s6 + $0xb8] sm:$0xff] }
  0xcb   : > { %v3247_v55 = vpop.f32.mrf.mxu0 }
  0xd0   : > { %1620 = vperm.xlu1 %2699, %v1562_v56  }
  0xd1   : > { %1625 = vperm.xlu2 %2700, %v1563_v57   ;;  %1615 = vperm.xlu0 %2698, %v1561_v58   ;;  %v3260_v60 = vpop.f32.mrf.mxu3  ;;  %v3360_v57 = vpop.permute.xlu0 %485 }
  0xd3   : > { %v3264_v62 = vpop.f32.mrf.mxu0 }
  0xd8   : > { %1740 = vperm.xlu1 %2699, %v1586_v0   ;;  %v3362_v0 = vpop.permute.xlu1 %555 }
  0xd9   : > { %1665 = vperm.xlu2 %2700, %v1571_v1   ;;  %1745 = vperm.xlu0 %2698, %v1587_v2   ;;  %v3277_v3 = vpop.f32.mrf.mxu3  ;;  %v1576_v1 = vld [vmem:[%s4429_s6 + $0xa0] sm:$0xff]  ;;  %v1575_v2 = vld [vmem:[%s4429_s6 + $0x98] sm:$0xff] }
  0xdb   : > { %v3281_v5 = vpop.f32.mrf.mxu0 }
  0xe0   : > { %1660 = vperm.xlu1 %2699, %v1570_v7   ;;  %v1577_v7 = vld [vmem:[%s4429_s6 + $0xa8] sm:$0xff] }
  0xe1   : > { %1730 = vperm.xlu2 %2700, %v1584_v8   ;;  %1735 = vperm.xlu0 %2698, %v1585_v9   ;;  %v3296_v11 = vpop.f32.mrf.mxu3  ;;  %v3373_v8 = vpop.permute.xlu2 %480 }
  0xe3   : > { %v3298_v12 = vpop.f32.mrf.mxu0 }
  0xe8   : > { %1725 = vperm.xlu1 %2699, %v1583_v14  }
  0xe9   : > { %1650 = vperm.xlu2 %2700, %v1568_v15   ;;  %1655 = vperm.xlu0 %2698, %v1569_v16   ;;  %v803_v19 = vpop.f32.mrf.mxu3 }
  0xeb   : > { %v3315_v20 = vpop.f32.mrf.mxu0 }
  0xf0   : > { %1645 = vperm.xlu1 %2699, %v1567_v22  }
  0xf1   : > { %1715 = vperm.xlu2 %2700, %v1581_v23   ;;  %1720 = vperm.xlu0 %2698, %v1582_v24   ;;  %v806_v29 = vpop.f32.mrf.mxu3  ;;  %v3378_v24 = vpop.permute.xlu0 %550 }
  0xf3   : > { %v3332_v33 = vpop.f32.mrf.mxu0 }
  0xf8   : > { %1710 = vperm.xlu1 %2699, %v1580_v34   ;;  %v807_v34 = vadd.f32 %v806_v29, %v3266_v63  ;;  %v3393_v29 = vpop.permute.xlu2 %545 }
  0xf9   : > { %1635 = vperm.xlu2 %2700, %v1565_v35   ;;  %1640 = vperm.xlu0 %2698, %v1566_v38   ;;  %v809_v40 = vpop.f32.mrf.mxu3  ;;  %v1573_v35 = vld [vmem:[%s4429_s6 + $0x88] sm:$0xff] }
  0xfa   : > { %v810_v16 = vadd.f32 %v809_v40, %v3262_v61  ;;  %v1574_v61 = vld [vmem:[%s4429_s6 + $0x90] sm:$0xff]  ;;  %v3391_v40 = vpop.permute.xlu1 %475  ;;  %vm846_vm4 = vcmp.gt.f32.partialorder %v807_v34, 0.0 }
  0xfb   : > { %v3347_v44 = vpop.f32.mrf.mxu0 }
  0xfc   : > { %v879_v63 = vmul.f32 0.01, %v810_v16  ;;  %vm847_vm3 = vcmp.gt.f32.partialorder %v810_v16, 0.0 }
 0x100   : > { %1630 = vperm.xlu1 %2699, %v1564_v48  }
 0x101   : > { %1700 = vperm.xlu2 %2700, %v1578_v49   ;;  %1705 = vperm.xlu0 %2698, %v1579_v50   ;;  %v812_v56 = vpop.f32.mrf.mxu3  ;;  %v878_v49 = vmul.f32 0.01, %v807_v34  ;;  %v798_v50 = vadd.f32 %v3277_v3, %v3313_v18  ;;  %v2103_v3 = vld [vmem:[%s4431_s8 + $0x8] sm:$0xff] }
 0x102   : > { %v813_v9 = vadd.f32 %v812_v56, %v3258_v59  ;;  %v804_v59 = vadd.f32 %v803_v19, %v3283_v6  ;;  %v801_v6 = vadd.f32 %v3296_v11, %v3300_v13 }
 0x103   : > { %v761_v58 = vpop.f32.mrf.mxu0  ;;  %vm843_vm9 = vcmp.gt.f32.partialorder %v798_v50, 0.0 }
 0x104   : > { %v880_v38 = vmul.f32 0.01, %v813_v9  ;;  %vm848_vm2 = vcmp.gt.f32.partialorder %v813_v9, 0.0  ;;  %v877_v56 = vmul.f32 0.01, %v804_v59  ;;  %vm845_vm5 = vcmp.gt.f32.partialorder %v804_v59, 0.0 }
 0x105   : > { %v762_v11 = vadd.f32 %v761_v58, %v3279_v4  ;;  %v876_v18 = vmul.f32 0.01, %v801_v6  ;;  %v2102_v4 = vld [vmem:[%s4431_s8] sm:$0xff]  ;;  %vm844_vm6 = vcmp.gt.f32.partialorder %v801_v6, 0.0  ;;  %v759_v58 = vadd.f32 %v3347_v44, %v3294_v10 }
 0x106   : > { %v912_v19 = vsel %vm848_vm2, %v813_v9, %v880_v38  ;;  %v910_v9 = vsel %vm846_vm4, %v807_v34, %v878_v49  ;;  %v756_v34 = vadd.f32 %v3332_v33, %v3311_v17  ;;  %v753_v38 = vadd.f32 %v3315_v20, %v3326_v26 }
 0x107   : > { %v908_v10 = vsel %vm844_vm6, %v801_v6, %v876_v18  ;;  %v863_v44 = vmul.f32 0.01, %v762_v11  ;;  %vm831_vm10 = vcmp.gt.f32.partialorder %v762_v11, 0.0  ;;  %v862_v33 = vmul.f32 0.01, %v759_v58 }
 0x108   : > { %1690 = vperm.xlu1 %2699, %v1576_v1   ;;  %vm830_vm12 = vcmp.gt.f32.partialorder %v759_v58, 0.0  ;;  %v861_v26 = vmul.f32 0.01, %v756_v34  ;;  %vm829_vm14 = vcmp.gt.f32.partialorder %v756_v34, 0.0  ;;  %vm828_vm0 = vcmp.gt.f32.partialorder %v753_v38, 0.0 }
 0x109   : > { %1685 = vperm.xlu2 %2700, %v1575_v2   ;;  %1695 = vperm.xlu0 %2698, %v1577_v7   ;;  %v815_v14 = vpop.f32.mrf.mxu3  ;;  %v911_v2 = vsel %vm847_vm3, %v810_v16, %v879_v63  ;;  %v795_v7 = vadd.f32 %v3260_v60, %v3328_v28  ;;  %v2104_v60 = vld [vmem:[%s4431_s8 + $0x10] sm:$0xff]  ;;  %v3415_v28 = vpop.permute.xlu0 %470  ;;  %v750_v63 = vadd.f32 %v3298_v12, %v3330_v30 }
 0x10a   : > { %v816_v15 = vadd.f32 %v815_v14, %v3239_v51  ;;  %v1572_v51 = vld [vmem:[%s4429_s6 + $0x80] sm:$0xff]  ;;  %v895_v6 = vsel %vm831_vm10, %v762_v11, %v863_v44  ;;  %v747_v12 = vadd.f32 %v3281_v5, %v3345_v43  ;;  %v894_v30 = vsel %vm830_vm12, %v759_v58, %v862_v33 }
 0x10b   : > { %v764_v22 = vpop.f32.mrf.mxu0  ;;  %vm842_vm11 = vcmp.gt.f32.partialorder %v795_v7, 0.0  ;;  %v859_v5 = vmul.f32 0.01, %v750_v63  ;;  %vm827_vm2 = vcmp.gt.f32.partialorder %v750_v63, 0.0 }
 0x10c   : > { %vm849_vm1 = vcmp.gt.f32.partialorder %v816_v15, 0.0  ;;  %v881_v23 = vmul.f32 0.01, %v816_v15  ;;  %v765_v1 = vadd.f32 %v764_v22, %v3245_v54  ;;  %v792_v54 = vadd.f32 %v3243_v53, %v3343_v39 }
 0x10d   : > { %v789_v39 = vadd.f32 %v3226_v46, %v3349_v45  ;;  %v874_v22 = vmul.f32 0.01, %v795_v7  ;;  %v3424_v45 = vpop.permute.xlu2 %465  ;;  %vm826_vm4 = vcmp.gt.f32.partialorder %v747_v12, 0.0 }
 0x10e   : > { %v913_v48 = vsel %vm849_vm1, %v816_v15, %v881_v23  ;;  %v909_v15 = vsel %vm845_vm5, %v804_v59, %v877_v56  ;;  %v864_v53 = vmul.f32 0.01, %v765_v1  ;;  %vm832_vm8 = vcmp.gt.f32.partialorder %v765_v1, 0.0  ;;  %v541_v23 = vpop.permute.xlu1 %540 }
 0x10f   : > { %1283 = vmatpush.msra.mxu2 %v913_v48  ;;  %v873_v46 = vmul.f32 0.01, %v792_v54  ;;  %v786_v48 = vadd.f32 %v3213_v41, %v3362_v0  ;;  %vm841_vm13 = vcmp.gt.f32.partialorder %v792_v54, 0.0  ;;  %v906_v20 = vsel %vm842_vm11, %v795_v7, %v874_v22  ;;  %v2107_v41 = vld [vmem:[%s4431_s8 + $0x28] sm:$0xff]  ;;  %v2105_v0 = vld [vmem:[%s4431_s8 + $0x18] sm:$0xff] }
 0x110   : > { %1675 = vperm.xlu1 %2699, %v1573_v35   ;;  %v896_v59 = vsel %vm832_vm8, %v765_v1, %v864_v53  ;;  %vm840_vm15 = vcmp.gt.f32.partialorder %v789_v39, 0.0  ;;  %v777_v43 = vadd.f32 %v3170_v25, %v541_v23  ;;  %v732_v23 = vadd.f32 %v3202_v37, %v3424_v45 }
 0x111   : > { %1670 = vperm.xlu2 %2700, %v1572_v51   ;;  %1680 = vperm.xlu0 %2698, %v1574_v61   ;;  %v872_v61 = vmul.f32 0.01, %v789_v39  ;;  %v905_v49 = vsel %vm841_vm13, %v792_v54, %v873_v46  ;;  %v871_v56 = vmul.f32 0.01, %v786_v48  ;;  %v536_v1 = vpop.permute.xlu0 %535  ;;  %vm839_vm1 = vcmp.gt.f32.partialorder %v786_v48, 0.0 }
 0x112   : > { %1284 = vmatpush.msra.mxu2 %v912_v19  ;;  %v783_v19 = vadd.f32 %v3200_v36, %v3378_v24  ;;  %v2106_v36 = vld [vmem:[%s4431_s8 + $0x20] sm:$0xff]  ;;  %v860_v24 = vmul.f32 0.01, %v753_v38  ;;  %vm821_vm13 = vcmp.gt.f32.partialorder %v732_v23, 0.0 }
 0x113   : > { %v767_v14 = vpop.f32.mrf.mxu0  ;;  %v904_v7 = vsel %vm840_vm15, %v789_v39, %v872_v61  ;;  %v903_v25 = vsel %vm839_vm1, %v786_v48, %v871_v56  ;;  %v2111_v61 = vld [vmem:[%s4431_s8 + $0x48] sm:$0xff] }
 0x114   : > { %1285 = vmatpush.msra.mxu2 %v911_v2  ;;  %v768_v13 = vadd.f32 %v767_v14, %v3241_v52  ;;  %v875_v52 = vmul.f32 0.01, %v798_v50  ;;  %v893_v2 = vsel %vm829_vm14, %v756_v34, %v861_v26  ;;  %v744_v14 = vadd.f32 %v3264_v62, %v3360_v57  ;;  %v919_v56 = vld [vmem:[%s4426_s3 + $0x28] sm:$0xff] }
 0x115   : > { %v892_v11 = vsel %vm828_vm0, %v753_v38, %v860_v24  ;;  %vm838_vm3 = vcmp.gt.f32.partialorder %v783_v19, 0.0  ;;  %v531_v62 = vpop.permute.xlu2 %530  ;;  %v738_v57 = vadd.f32 %v3228_v47, %v3391_v40  ;;  %v2108_v47 = vld [vmem:[%s4431_s8 + $0x30] sm:$0xff]  ;;  %v2109_v40 = vld [vmem:[%s4431_s8 + $0x38] sm:$0xff] }
 0x116   : > { %1286 = vmatpush.msra.mxu2 %v910_v9  ;;  %vm833_vm7 = vcmp.gt.f32.partialorder %v768_v13, 0.0  ;;  %v865_v16 = vmul.f32 0.01, %v768_v13  ;;  %v907_v17 = vsel %vm843_vm9, %v798_v50, %v875_v52  ;;  %v780_v50 = vadd.f32 %v3187_v31, %v3393_v29  ;;  %v461_v29 = vpop.permute.xlu1 %460 }
 0x117   : > { %v870_v31 = vmul.f32 0.01, %v783_v19  ;;  %v741_v9 = vadd.f32 %v3247_v55, %v3373_v8  ;;  %v2110_v55 = vld [vmem:[%s4431_s8 + $0x40] sm:$0xff]  ;;  %v857_v8 = vmul.f32 0.01, %v744_v14  ;;  %vm825_vm6 = vcmp.gt.f32.partialorder %v744_v14, 0.0 }
 0x118   : > { %1287 = vmatpush.msra.mxu2 %v909_v15  ;;  %2125 = vperm.xlu1 %2699, %v2103_v3   ;;  %v897_v35 = vsel %vm833_vm7, %v768_v13, %v865_v16  ;;  %v858_v13 = vmul.f32 0.01, %v747_v12  ;;  %v869_v18 = vmul.f32 0.01, %v780_v50  ;;  %v891_v15 = vsel %vm827_vm2, %v750_v63, %v859_v5  ;;  %v2112_v63 = vld [vmem:[%s4431_s8 + $0x50] sm:$0xff] }
 0x119   : > { %2130 = vperm.xlu2 %2700, %v2104_v60   ;;  %2120 = vperm.xlu0 %2698, %v2102_v4   ;;  %vm837_vm5 = vcmp.gt.f32.partialorder %v780_v50, 0.0  ;;  %v902_v4 = vsel %vm838_vm3, %v783_v19, %v870_v31  ;;  %v868_v52 = vmul.f32 0.01, %v777_v43  ;;  %vm836_vm7 = vcmp.gt.f32.partialorder %v777_v43, 0.0  ;;  %v456_v46 = vpop.permute.xlu0 %455  ;;  %v916_v5 = vld [vmem:[%s4426_s3 + $0x10] sm:$0xff] }
 0x11a   : > { %1170 = vmatpush.msra.mxu1 %v897_v35  ;;  %1288 = vmatpush.msra.mxu2 %v908_v10  ;;  %v890_v58 = vsel %vm826_vm4, %v747_v12, %v858_v13  ;;  %v735_v16 = vadd.f32 %v3215_v42, %v3415_v28  ;;  %v901_v53 = vsel %vm837_vm5, %v780_v50, %v869_v18  ;;  %v856_v39 = vmul.f32 0.01, %v741_v9  ;;  %v914_v50 = vld [vmem:[%s4426_s3] sm:$0xff]  ;;  %v2378_v31 = vld [vmem:[%s4432_s9 + $0x10] sm:$0xff]  ;;  %v923_v13 = vld [vmem:[%s4426_s3 + $0x48] sm:$0xff] }
 0x11b   : > { %v770_v51 = vpop.f32.mrf.mxu0  ;;  %vm824_vm8 = vcmp.gt.f32.partialorder %v741_v9, 0.0  ;;  %v889_v34 = vsel %vm825_vm6, %v744_v14, %v857_v8  ;;  %v900_v35 = vsel %vm836_vm7, %v777_v43, %v868_v52  ;;  %v855_v10 = vmul.f32 0.01, %v738_v57  ;;  %v921_v43 = vld [vmem:[%s4426_s3 + $0x38] sm:$0xff]  ;;  %v2380_v14 = vld [vmem:[%s4432_s9 + $0x20] sm:$0xff]  ;;  %v920_v18 = vld [vmem:[%s4426_s3 + $0x30] sm:$0xff] }
 0x11c   : > { %1171 = vmatpush.msra.mxu1 %v896_v59  ;;  %1289 = vmatpush.msra.mxu2 %v907_v17  ;;  %v771_v60 = vadd.f32 %v770_v51, %v531_v62  ;;  %vm823_vm10 = vcmp.gt.f32.partialorder %v738_v57, 0.0  ;;  %v729_v42 = vadd.f32 %v3189_v32, %v461_v29  ;;  %v888_v28 = vsel %vm824_vm8, %v741_v9, %v856_v39  ;;  %v915_v59 = vld [vmem:[%s4426_s3 + $0x8] sm:$0xff]  ;;  %v2113_v51 = vld [vmem:[%s4431_s8 + $0x58] sm:$0xff]  ;;  %v2388_v52 = vld [vmem:[%s4432_s9 + $0x60] sm:$0xff] }
 0x11d   : > { %v854_v37 = vmul.f32 0.01, %v735_v16  ;;  %vm822_vm12 = vcmp.gt.f32.partialorder %v735_v16, 0.0  ;;  %v726_v17 = vadd.f32 %v3175_v27, %v456_v46  ;;  %v887_v33 = vsel %vm823_vm10, %v738_v57, %v855_v10  ;;  %v2379_v29 = vld [vmem:[%s4432_s9 + $0x18] sm:$0xff]  ;;  %v2386_v57 = vld [vmem:[%s4432_s9 + $0x50] sm:$0xff]  ;;  %v926_v39 = vld [vmem:[%s4426_s3 + $0x60] sm:$0xff] }
 0x11e   : > { %1172 = vmatpush.msra.mxu1 %v895_v6  ;;  %1290 = vmatpush.msra.mxu2 %v906_v20  ;;  %v866_v44 = vmul.f32 0.01, %v771_v60  ;;  %vm834_vm11 = vcmp.gt.f32.partialorder %v771_v60, 0.0  ;;  %v451_v45 = vpop.permute.xlu1 %450  ;;  %v853_v32 = vmul.f32 0.01, %v732_v23  ;;  %vm820_vm14 = vcmp.gt.f32.partialorder %v729_v42, 0.0 }
 0x11f   : > { %v723_v27 = vadd.f32 %v3158_v21, %v451_v45  ;;  %v886_v6 = vsel %vm822_vm12, %v735_v16, %v854_v37  ;;  %v852_v20 = vmul.f32 0.01, %v729_v42  ;;  %v851_v19 = vmul.f32 0.01, %v726_v17  ;;  %v917_v21 = vld [vmem:[%s4426_s3 + $0x18] sm:$0xff]  ;;  %v2390_v16 = vld [vmem:[%s4432_s9 + $0x70] sm:$0xff] }
 0x120   : > { %1173 = vmatpush.msra.mxu1 %v894_v30  ;;  %1291 = vmatpush.msra.mxu2 %v905_v49  ;;  %v898_v48 = vsel %vm834_vm11, %v771_v60, %v866_v44  ;;  %v885_v26 = vsel %vm821_vm13, %v732_v23, %v853_v32  ;;  %vm819_vm15 = vcmp.gt.f32.partialorder %v726_v17, 0.0  ;;  %v2116_v30 = vld [vmem:[%s4431_s8 + $0x70] sm:$0xff]  ;;  %v2114_v49 = vld [vmem:[%s4431_s8 + $0x60] sm:$0xff]  ;;  %v2383_v9 = vld [vmem:[%s4432_s9 + $0x38] sm:$0xff] }
 0x121   : > { %2145 = vperm.xlu2 %2700, %v2107_v41   ;;  %2135 = vperm.xlu0 %2698, %v2105_v0   ;;  %v884_v41 = vsel %vm820_vm14, %v729_v42, %v852_v20  ;;  %v850_v0 = vmul.f32 0.01, %v723_v27  ;;  %vm818_vm0 = vcmp.gt.f32.partialorder %v723_v27, 0.0  ;;  %v883_v12 = vsel %vm819_vm15, %v726_v17, %v851_v19  ;;  %v925_v62 = vld [vmem:[%s4426_s3 + $0x58] sm:$0xff]  ;;  %v922_v60 = vld [vmem:[%s4426_s3 + $0x40] sm:$0xff]  ;;  %v928_v23 = vld [vmem:[%s4426_s3 + $0x70] sm:$0xff] }
 0x122   : > { %2140 = vperm.xlu1 %2699, %v2106_v36   ;;  %1174 = vmatpush.msra.mxu1 %v893_v2  ;;  %v2115_v36 = vld [vmem:[%s4431_s8 + $0x68] sm:$0xff]  ;;  %v2117_v2 = vld [vmem:[%s4431_s8 + $0x78] sm:$0xff]  ;;  %v932_v44 = vld [vmem:[%s4426_s3 + $0x90] sm:$0xff] }
 0x123   : > { %1292 = vmatpush.msra.mxu2 %v904_v7  ;;  %v773_v3 = vpop.f32.mrf.mxu0  ;;  %v882_v24 = vsel %vm818_vm0, %v723_v27, %v850_v0  ;;  %v2376_v7 = vld [vmem:[%s4432_s9] sm:$0xff]  ;;  %v2387_v8 = vld [vmem:[%s4432_s9 + $0x58] sm:$0xff]  ;;  %v935_v10 = vld [vmem:[%s4426_s3 + $0xa8] sm:$0xff] }
 0x124   : > { %1175 = vmatpush.msra.mxu1 %v892_v11  ;;  %v774_v54 = vadd.f32 %v773_v3, %v536_v1  ;;  %v2377_v1 = vld [vmem:[%s4432_s9 + $0x8] sm:$0xff]  ;;  %v918_v11 = vld [vmem:[%s4426_s3 + $0x20] sm:$0xff]  ;;  %v937_v46 = vld [vmem:[%s4426_s3 + $0xb8] sm:$0xff] }
 0x125   : > { %1293 = vmatpush.msra.mxu2 %v903_v25  ;;  %v2381_v3 = vld [vmem:[%s4432_s9 + $0x28] sm:$0xff]  ;;  %v2382_v25 = vld [vmem:[%s4432_s9 + $0x30] sm:$0xff]  ;;  %v934_v42 = vld [vmem:[%s4426_s3 + $0xa0] sm:$0xff] }
 0x126   : > { %1176 = vmatpush.msra.mxu1 %v891_v15  ;;  %v867_v22 = vmul.f32 0.01, %v774_v54  ;;  %vm835_vm9 = vcmp.gt.f32.partialorder %v774_v54, 0.0  ;;  %v2385_v15 = vld [vmem:[%s4432_s9 + $0x48] sm:$0xff]  ;;  %v941_v37 = vld [vmem:[%s4426_s3 + $0xd8] sm:$0xff]  ;;  %v938_v45 = vld [vmem:[%s4426_s3 + $0xc0] sm:$0xff] }
 0x127   : > { %1294 = vmatpush.msra.mxu2 %v902_v4  ;;  %v927_v4 = vld [vmem:[%s4426_s3 + $0x68] sm:$0xff]  ;;  %v940_v17 = vld [vmem:[%s4426_s3 + $0xd0] sm:$0xff] }
 0x128   : > { %1177 = vmatpush.msra.mxu1 %v890_v58  ;;  %v899_v38 = vsel %vm835_vm9, %v774_v54, %v867_v22  ;;  %v2384_v54 = vld [vmem:[%s4432_s9 + $0x40] sm:$0xff]  ;;  %v924_v58 = vld [vmem:[%s4426_s3 + $0x50] sm:$0xff]  ;;  %v931_v22 = vld [vmem:[%s4426_s3 + $0x88] sm:$0xff] }
 0x129   : > { %1295 = vmatpush.msra.mxu2 %v901_v53  ;;  %2160 = vperm.xlu2 %2700, %v2110_v55   ;;  %v2389_v55 = vld [vmem:[%s4432_s9 + $0x68] sm:$0xff]  ;;  %v2391_v53 = vld [vmem:[%s4432_s9 + $0x78] sm:$0xff]  ;;  %v944_v32 = vld [vmem:[%s4426_s3 + $0xf0] sm:$0xff] }
 0x12a   : > { %2150 = vperm.xlu0 %2698, %v2108_v47   ;;  %2155 = vperm.xlu1 %2699, %v2109_v40   ;;  %v929_v47 = vld [vmem:[%s4426_s3 + $0x78] sm:$0xff]  ;;  %v2509_v40 = vld [vmem:[#allocation2] sm:$0x1] }
 0x12b   : > { %1178 = vmatpush.msra.mxu1 %v889_v34  ;;  %1296 = vmatpush.msra.mxu2 %v900_v35  ;;  %v933_v34 = vld [vmem:[%s4426_s3 + $0x98] sm:$0xff]  ;;  %v930_v35 = vld [vmem:[%s4426_s3 + $0x80] sm:$0xff] }
 0x12d   : > { %1179 = vmatpush.msra.mxu1 %v888_v28  ;;  %1297 = vmatpush.msra.mxu2 %v899_v38  ;;  %v939_v28 = vld [vmem:[%s4426_s3 + $0xc8] sm:$0xff]  ;;  %v936_v38 = vld [vmem:[%s4426_s3 + $0xb0] sm:$0xff] }
 0x12f   : > { %1180 = vmatpush.msra.mxu1 %v887_v33  ;;  %1298 = vmatpush.msra.mxu2 %v898_v48  ;;  %v945_v33 = vld [vmem:[%s4426_s3 + $0xf8] sm:$0xff]  ;;  %v942_v48 = vld [vmem:[%s4426_s3 + $0xe0] sm:$0xff] }
 0x130   : > { %1299 = vmatmul.f32.vlgmr.msra.gmra.mxu2 %v915_v59  ;;  %v943_v59 = vld [vmem:[%s4426_s3 + $0xe8] sm:$0xff] }
 0x131   : > { %1181 = vmatpush.msra.mxu1 %v886_v6  ;;  %2175 = vperm.xlu2 %2700, %v2113_v51   ;;  %v947_v51 = vld [vmem:[%s4426_s3 + $0x108] sm:$0xff]  ;;  %v946_v6 = vld [vmem:[%s4426_s3 + $0x100] sm:$0xff] }
 0x132   : > { %2165 = vperm.xlu0 %2698, %v2111_v61   ;;  %2170 = vperm.xlu1 %2699, %v2112_v63   ;;  %v949_v63 = vld [vmem:[%s4426_s3 + $0x118] sm:$0xff] }
 0x133   : > { %1182 = vmatpush.msra.mxu1 %v885_v26  ;;  %v951_v26 = vld [vmem:[%s4426_s3 + $0x128] sm:$0xff] }
 0x135   : > { %1183 = vmatpush.msra.mxu1 %v884_v41  ;;  %v948_v41 = vld [vmem:[%s4426_s3 + $0x110] sm:$0xff] }
 0x137   : > { %1184 = vmatpush.msra.mxu1 %v883_v12 }
 0x138   : > { %1302 = vmatmul.f32.gmra.mxu2 %v917_v21  ;;  %v953_v21 = vld [vmem:[%s4426_s3 + $0x138] sm:$0xff] }
 0x139   : > { %1185 = vmatpush.msra.mxu1 %v882_v24  ;;  %2190 = vperm.xlu2 %2700, %v2116_v30   ;;  %v950_v30 = vld [vmem:[%s4426_s3 + $0x120] sm:$0xff] }
 0x13a   : > { %2180 = vperm.xlu0 %2698, %v2114_v49   ;;  %2185 = vperm.xlu1 %2699, %v2115_v36   ;;  %v955_v36 = vld [vmem:[%s4426_s3 + $0x148] sm:$0xff] }
 0x13b   : > { %1186 = vmatmul.f32.vlgmr.msra.gmra.mxu1 %v914_v50  ;;  %v952_v50 = vld [vmem:[%s4426_s3 + $0x130] sm:$0xff] }
 0x140   : > { %1305 = vmatmul.f32.gmra.mxu2 %v919_v56 }
 0x141   : > { %2399 = vperm.xlu2 %2700, %v2377_v1   ;;  %v957_v1 = vld [vmem:[%s4426_s3 + $0x158] sm:$0xff] }
 0x142   : > { %2195 = vperm.xlu0 %2698, %v2117_v2   ;;  %2394 = vperm.xlu1 %2699, %v2376_v7   ;;  %v954_v7 = vld [vmem:[%s4426_s3 + $0x140] sm:$0xff] }
 0x143   : > { %1189 = vmatmul.f32.gmra.mxu1 %v916_v5 }
 0x148   : > { %1308 = vmatmul.f32.gmra.mxu2 %v921_v43  ;;  %v959_v43 = vld [vmem:[%s4426_s3 + $0x168] sm:$0xff] }
 0x149   : > { %2414 = vperm.xlu2 %2700, %v2380_v14  }
 0x14a   : > { %2404 = vperm.xlu0 %2698, %v2378_v31   ;;  %2409 = vperm.xlu1 %2699, %v2379_v29   ;;  %v956_v31 = vld [vmem:[%s4426_s3 + $0x150] sm:$0xff] }
 0x14b   : > { %1192 = vmatmul.f32.gmra.mxu1 %v918_v11  ;;  %v961_v11 = vld [vmem:[%s4426_s3 + $0x178] sm:$0xff] }
 0x150   : > { %1311 = vmatmul.f32.gmra.mxu2 %v923_v13 }
 0x151   : > { %2429 = vperm.xlu2 %2700, %v2383_v9   ;;  %v958_v9 = vld [vmem:[%s4426_s3 + $0x160] sm:$0xff] }
 0x152   : > { %2419 = vperm.xlu0 %2698, %v2381_v3   ;;  %2424 = vperm.xlu1 %2699, %v2382_v25   ;;  %v963_v25 = vld [vmem:[%s4426_s3 + $0x188] sm:$0xff] }
 0x153   : > { %1195 = vmatmul.f32.gmra.mxu1 %v920_v18 }
 0x158   : > { %1314 = vmatmul.f32.gmra.mxu2 %v925_v62  ;;  %v960_v62 = vld [vmem:[%s4426_s3 + $0x170] sm:$0xff] }
 0x159   : > { %2444 = vperm.xlu2 %2700, %v2386_v57  }
 0x15a   : > { %2434 = vperm.xlu0 %2698, %v2384_v54   ;;  %2439 = vperm.xlu1 %2699, %v2385_v15   ;;  %v965_v54 = vld [vmem:[%s4426_s3 + $0x198] sm:$0xff]  ;;  %v3731_v15 = vpop.permute.xlu2 %1087 }
 0x15b   : > { %1198 = vmatmul.f32.gmra.mxu1 %v922_v60  ;;  %v1078_v60 = vpop.permute.xlu1 %1077 }
 0x160   : > { %1317 = vmatmul.f32.gmra.mxu2 %v927_v4 }
 0x161   : > { %2459 = vperm.xlu2 %2700, %v2389_v55   ;;  %v962_v55 = vld [vmem:[%s4426_s3 + $0x180] sm:$0xff] }
 0x162   : > { %2449 = vperm.xlu0 %2698, %v2387_v8   ;;  %2454 = vperm.xlu1 %2699, %v2388_v52   ;;  %v967_v52 = vld [vmem:[%s4426_s3 + $0x1a8] sm:$0xff] }
 0x163   : > { %1201 = vmatmul.f32.gmra.mxu1 %v924_v58  ;;  %v1083_v58 = vpop.permute.xlu0 %1082 }
 0x168   : > { %1320 = vmatmul.f32.gmra.mxu2 %v929_v47  ;;  %v1073_v47 = vpop.permute.xlu2 %1072 }
 0x169   : > { %2512 = vperm.xlu2 %2700, %v2509_v40  }
 0x16a   : > { %2464 = vperm.xlu0 %2698, %v2390_v16   ;;  %2469 = vperm.xlu1 %2699, %v2391_v53   ;;  %v964_v16 = vld [vmem:[%s4426_s3 + $0x190] sm:$0xff]  ;;  %v3748_v53 = vpop.permute.xlu1 %1167 }
 0x16b   : > { %1204 = vmatmul.f32.gmra.mxu1 %v926_v39 }
 0x170   : > { %1323 = vmatmul.f32.gmra.mxu2 %v931_v22  ;;  %v969_v22 = vld [vmem:[%s4426_s3 + $0x1b8] sm:$0xff] }
 0x173   : > { %1207 = vmatmul.f32.gmra.mxu1 %v928_v23  ;;  %v1068_v23 = vpop.permute.xlu0 %1067 }
 0x178   : > { %1326 = vmatmul.f32.gmra.mxu2 %v933_v34 }
 0x17b   : > { %1210 = vmatmul.f32.gmra.mxu1 %v930_v35  ;;  %v966_v35 = vld [vmem:[%s4426_s3 + $0x1a0] sm:$0xff] }
 0x180   : > { %1329 = vmatmul.f32.gmra.mxu2 %v935_v10  ;;  %v1063_v10 = vpop.permute.xlu2 %1062 }
 0x183   : > { %1213 = vmatmul.f32.gmra.mxu1 %v932_v44 }
 0x188   : > { %1332 = vmatmul.f32.gmra.mxu2 %v937_v46  ;;  %v1058_v46 = vpop.permute.xlu1 %1057 }
 0x18b   : > { %1216 = vmatmul.f32.gmra.mxu1 %v934_v42  ;;  %v971_v42 = vld [vmem:[%s4426_s3 + $0x1c8] sm:$0xff] }
 0x190   : > { %1335 = vmatmul.f32.gmra.mxu2 %v939_v28 }
 0x193   : > { %1219 = vmatmul.f32.gmra.mxu1 %v936_v38  ;;  %v968_v38 = vld [vmem:[%s4426_s3 + $0x1b0] sm:$0xff] }
 0x198   : > { %1338 = vmatmul.f32.gmra.mxu2 %v941_v37  ;;  %v3764_v37 = vpop.permute.xlu0 %1162 }
 0x19b   : > { %1222 = vmatmul.f32.gmra.mxu1 %v938_v45 }
 0x1a0   : > { %1341 = vmatmul.f32.gmra.mxu2 %v943_v59  ;;  %v3766_v59 = vpop.permute.xlu2 %1157 }
 0x1a3   : > { %1225 = vmatmul.f32.gmra.mxu1 %v940_v17  ;;  %v973_v17 = vld [vmem:[%s4426_s3 + $0x1d8] sm:$0xff] }
 0x1a8   : > { %1344 = vmatmul.f32.gmra.mxu2 %v945_v33  ;;  %v3771_v33 = vpop.permute.xlu1 %1152 }
 0x1ab   : > { %1228 = vmatmul.f32.gmra.mxu1 %v942_v48 }
 0x1b0   : > { %1347 = vmatmul.f32.gmra.mxu2 %v947_v51  ;;  %v970_v51 = vld [vmem:[%s4426_s3 + $0x1c0] sm:$0xff] }
 0x1b3   : > { %1231 = vmatmul.f32.gmra.mxu1 %v944_v32  ;;  %v3646_v61 = vpop.f32.mrf.mxu2 }
 0x1b8   : > { %v3651_v27 = vpop.f32.mrf.mxu1  ;;  %1350 = vmatmul.f32.gmra.mxu2 %v949_v63  ;;  %v1053_v63 = vpop.permute.xlu0 %1052 }
 0x1bb   : > { %1234 = vmatmul.f32.gmra.mxu1 %v946_v6  ;;  %v3656_v20 = vpop.f32.mrf.mxu2  ;;  %v975_v6 = vld [vmem:[%s4426_s3 + $0x1e8] sm:$0xff] }
 0x1c0   : > { %v3661_v19 = vpop.f32.mrf.mxu1  ;;  %1353 = vmatmul.f32.gmra.mxu2 %v951_v26  ;;  %v1048_v26 = vpop.permute.xlu2 %1047 }
 0x1c3   : > { %1237 = vmatmul.f32.gmra.mxu1 %v948_v41  ;;  %v3666_v0 = vpop.f32.mrf.mxu2  ;;  %v1043_v41 = vpop.permute.xlu1 %1042 }
 0x1c8   : > { %v3671_v12 = vpop.f32.mrf.mxu1  ;;  %1356 = vmatmul.f32.gmra.mxu2 %v953_v21 }
 0x1cb   : > { %1240 = vmatmul.f32.gmra.mxu1 %v950_v30  ;;  %v3676_v49 = vpop.f32.mrf.mxu2  ;;  %v972_v30 = vld [vmem:[%s4426_s3 + $0x1d0] sm:$0xff] }
 0x1d0   : > { %v3681_v24 = vpop.f32.mrf.mxu1  ;;  %1359 = vmatmul.f32.gmra.mxu2 %v955_v36 }
 0x1d3   : > { %1243 = vmatmul.f32.gmra.mxu1 %v952_v50  ;;  %v3686_v56 = vpop.f32.mrf.mxu2  ;;  %v977_v50 = vld [vmem:[%s4426_s3 + $0x1f8] sm:$0xff] }
 0x1d8   : > { %v3691_v2 = vpop.f32.mrf.mxu1  ;;  %1362 = vmatmul.f32.gmra.mxu2 %v957_v1  ;;  %v3785_v1 = vpop.permute.xlu0 %1147 }
 0x1db   : > { %1246 = vmatmul.f32.gmra.mxu1 %v954_v7  ;;  %v3696_v5 = vpop.f32.mrf.mxu2  ;;  %v3787_v7 = vpop.permute.xlu2 %1142 }
 0x1e0   : > { %v3701_v14 = vpop.f32.mrf.mxu1  ;;  %1365 = vmatmul.f32.gmra.mxu2 %v959_v43 }
 0x1e3   : > { %1249 = vmatmul.f32.gmra.mxu1 %v956_v31  ;;  %v3706_v29 = vpop.f32.mrf.mxu2  ;;  %v974_v31 = vld [vmem:[%s4426_s3 + $0x1e0] sm:$0xff] }
 0x1e8   : > { %v3711_v13 = vpop.f32.mrf.mxu1  ;;  %1368 = vmatmul.f32.gmra.mxu2 %v961_v11  ;;  %v3792_v11 = vpop.permute.xlu1 %1137 }
 0x1eb   : > { %1252 = vmatmul.f32.gmra.mxu1 %v958_v9  ;;  %v3716_v3 = vpop.f32.mrf.mxu2 }
 0x1f0   : > { %v3721_v18 = vpop.f32.mrf.mxu1  ;;  %1371 = vmatmul.f32.gmra.mxu2 %v963_v25 }
 0x1f3   : > { %1255 = vmatmul.f32.gmra.mxu1 %v960_v62  ;;  %v3726_v57 = vpop.f32.mrf.mxu2 }
 0x1f8   : > { %v3733_v4 = vpop.f32.mrf.mxu1  ;;  %1374 = vmatmul.f32.gmra.mxu2 %v965_v54  ;;  %v1038_v54 = vpop.permute.xlu0 %1037 }
 0x1fb   : > { %1258 = vmatmul.f32.gmra.mxu1 %v962_v55  ;;  %v3738_v8 = vpop.f32.mrf.mxu2 }
 0x200   : > { %v3743_v40 = vpop.f32.mrf.mxu1  ;;  %1377 = vmatmul.f32.gmra.mxu2 %v967_v52  ;;  %v976_v52 = vld [vmem:[%s4426_s3 + $0x1f0] sm:$0xff] }
 0x203   : > { %1261 = vmatmul.f32.gmra.mxu1 %v964_v16  ;;  %v3750_v39 = vpop.f32.mrf.mxu2 }
 0x208   : > { %v1217_v34 = vpop.f32.mrf.mxu1  ;;  %1380 = vmatmul.f32.gmra.mxu2 %v969_v22 }
 0x20b   : > { %1264 = vmatmul.f32.gmra.mxu1 %v966_v35  ;;  %v1333_v44 = vpop.f32.mrf.mxu2 }
 0x210   : > { %v1220_v28 = vpop.f32.mrf.mxu1  ;;  %1383 = vmatmul.f32.gmra.mxu2 %v971_v42  ;;  %v1033_v42 = vpop.permute.xlu2 %1032 }
 0x213   : > { %1267 = vmatmul.f32.gmra.mxu1 %v968_v38  ;;  %v1336_v45 = vpop.f32.mrf.mxu2  ;;  %v1221_v38 = vadd.f32 %v1220_v28, %v1068_v23  ;;  %v1212_v23 = vadd.f32 %v3733_v4, %v1053_v63  ;;  %v1206_v4 = vadd.f32 %v3711_v13, %v1043_v41  ;;  %v1200_v13 = vadd.f32 %v3691_v2, %v1033_v42 }
 0x215   : > { %v1313_v2 = vadd.f32 %v3686_v56, %v1200_v13 }
 0x217   : > { %vm1400_vm12 = vcmp.gt.f32.partialorder %v1313_v2, 0.0 }
 0x218   : > { %v1223_v48 = vpop.f32.mrf.mxu1  ;;  %1386 = vmatmul.f32.gmra.mxu2 %v973_v17 }
 0x219   : > { %v1224_v16 = vadd.f32 %v1223_v48, %v1073_v47  ;;  %v1334_v47 = vadd.f32 %v1333_v44, %v1221_v38 }
 0x21b   : > { %1270 = vmatmul.f32.gmra.mxu1 %v970_v51  ;;  %v1339_v32 = vpop.f32.mrf.mxu2  ;;  %vm1407_vm5 = vcmp.gt.f32.partialorder %v1334_v47, 0.0 }
 0x220   : > { %v1226_v21 = vpop.f32.mrf.mxu1  ;;  %1389 = vmatmul.f32.gmra.mxu2 %v975_v6 }
 0x221   : > { %v1227_v62 = vadd.f32 %v1226_v21, %v1078_v60  ;;  %v1337_v60 = vadd.f32 %v1336_v45, %v1224_v16  ;;  %v1209_v45 = vadd.f32 %v3721_v18, %v1048_v26  ;;  %v1203_v18 = vadd.f32 %v3701_v14, %v1038_v54 }
 0x223   : > { %1273 = vmatmul.f32.gmra.mxu1 %v972_v30  ;;  %v1342_v36 = vpop.f32.mrf.mxu2  ;;  %v1340_v17 = vadd.f32 %v1339_v32, %v1227_v62  ;;  %v1028_v30 = vpop.permute.xlu1 %1027  ;;  %vm1408_vm4 = vcmp.gt.f32.partialorder %v1337_v60, 0.0  ;;  %v1316_v14 = vadd.f32 %v3696_v5, %v1203_v18  ;;  %v1496_v18 = vld [vmem:[%s4428_s5 + $0x20] sm:$0xff] }
 0x225   : > { %vm1409_vm3 = vcmp.gt.f32.partialorder %v1340_v17, 0.0  ;;  %vm1401_vm11 = vcmp.gt.f32.partialorder %v1316_v14, 0.0 }
 0x228   : > { %v1229_v43 = vpop.f32.mrf.mxu1  ;;  %1392 = vmatmul.f32.gmra.mxu2 %v977_v50 }
 0x229   : > { %v1230_v25 = vadd.f32 %v1229_v43, %v1083_v58  ;;  %v1218_v58 = vadd.f32 %v1217_v34, %v1063_v10  ;;  %v1215_v43 = vadd.f32 %v3743_v40, %v1058_v46  ;;  %v1440_v34 = vmul.f32 0.01, %v1337_v60  ;;  %v3805_v10 = vpop.permute.xlu0 %1132 }
 0x22a   : > { %v1439_v46 = vmul.f32 0.01, %v1334_v47 }
 0x22b   : > { %1276 = vmatmul.f32.gmra.mxu1 %v974_v31  ;;  %v1345_v9 = vpop.f32.mrf.mxu2  ;;  %v1343_v22 = vadd.f32 %v1342_v36, %v1230_v25  ;;  %v1441_v36 = vmul.f32 0.01, %v1340_v17  ;;  %v1331_v28 = vadd.f32 %v3750_v39, %v1218_v58  ;;  %v1328_v40 = vadd.f32 %v3738_v8, %v1215_v43  ;;  %v3815_v62 = vpop.permute.xlu1 %1122 }
 0x22c   : > { %v1325_v39 = vadd.f32 %v3726_v57, %v1212_v23  ;;  %v1472_v63 = vsel %vm1408_vm4, %v1337_v60, %v1440_v34  ;;  %v1322_v8 = vadd.f32 %v3716_v3, %v1209_v45  ;;  %v1471_v26 = vsel %vm1407_vm5, %v1334_v47, %v1439_v46 }
 0x22d   : > { %v1442_v50 = vmul.f32 0.01, %v1343_v22  ;;  %vm1410_vm2 = vcmp.gt.f32.partialorder %v1343_v22, 0.0  ;;  %v1473_v44 = vsel %vm1409_vm3, %v1340_v17, %v1441_v36  ;;  %v1438_v25 = vmul.f32 0.01, %v1331_v28 }
 0x22e   : > { %vm1406_vm6 = vcmp.gt.f32.partialorder %v1331_v28, 0.0  ;;  %vm1405_vm7 = vcmp.gt.f32.partialorder %v1328_v40, 0.0  ;;  %v1319_v57 = vadd.f32 %v3706_v29, %v1206_v4  ;;  %v1436_v16 = vmul.f32 0.01, %v1325_v39 }
 0x22f   : > { %v1474_v32 = vsel %vm1410_vm2, %v1343_v22, %v1442_v50  ;;  %v1470_v41 = vsel %vm1406_vm6, %v1331_v28, %v1438_v25  ;;  %vm1404_vm8 = vcmp.gt.f32.partialorder %v1325_v39, 0.0  ;;  %v1197_v22 = vadd.f32 %v3681_v24, %v1028_v30 }
 0x230   : > { %v1232_v55 = vpop.f32.mrf.mxu1  ;;  %v1435_v3 = vmul.f32 0.01, %v1322_v8  ;;  %vm1403_vm9 = vcmp.gt.f32.partialorder %v1322_v8, 0.0  ;;  %v1468_v29 = vsel %vm1404_vm8, %v1325_v39, %v1436_v16  ;;  %v1434_v42 = vmul.f32 0.01, %v1319_v57  ;;  %v1494_v39 = vld [vmem:[%s4428_s5 + $0x10] sm:$0xff] }
 0x231   : > { %v1233_v35 = vadd.f32 %v1232_v55, %v3731_v15  ;;  %v1437_v55 = vmul.f32 0.01, %v1328_v40  ;;  %v1023_v38 = vpop.permute.xlu0 %1022  ;;  %vm1402_vm10 = vcmp.gt.f32.partialorder %v1319_v57, 0.0  ;;  %v1310_v5 = vadd.f32 %v3676_v49, %v1197_v22  ;;  %v1500_v22 = vld [vmem:[%s4428_s5 + $0x40] sm:$0xff] }
 0x232   : > { %v1194_v17 = vadd.f32 %v3671_v12, %v1023_v38  ;;  %v1467_v30 = vsel %vm1403_vm9, %v1322_v8, %v1435_v3  ;;  %v1433_v58 = vmul.f32 0.01, %v1316_v14  ;;  %v1466_v50 = vsel %vm1402_vm10, %v1319_v57, %v1434_v42 }
 0x233   : > { %v1346_v51 = vadd.f32 %v1345_v9, %v1233_v35  ;;  %1279 = vmatmul.f32.gmra.mxu1 %v976_v52  ;;  %v3798_v6 = vpop.f32.mrf.mxu2  ;;  %v3811_v9 = vpop.permute.xlu2 %1127  ;;  %v1469_v54 = vsel %vm1405_vm7, %v1328_v40, %v1437_v55  ;;  %v1432_v43 = vmul.f32 0.01, %v1313_v2  ;;  %vm1399_vm13 = vcmp.gt.f32.partialorder %v1310_v5, 0.0  ;;  %v1498_v55 = vld [vmem:[%s4428_s5 + $0x30] sm:$0xff] }
 0x234   : > { %v1013_v60 = vpop.permute.xlu1 %1012  ;;  %v1307_v56 = vadd.f32 %v3666_v0, %v1194_v17  ;;  %v1502_v17 = vld [vmem:[%s4428_s5 + $0x50] sm:$0xff] }
 0x235   : > { %vm1411_vm1 = vcmp.gt.f32.partialorder %v1346_v51, 0.0  ;;  %v1443_v21 = vmul.f32 0.01, %v1346_v51  ;;  %v1188_v12 = vadd.f32 %v3651_v27, %v1013_v60  ;;  %v1464_v23 = vsel %vm1400_vm12, %v1313_v2, %v1432_v43  ;;  %v1510_v60 = vld [vmem:[%s4428_s5 + $0x90] sm:$0xff] }
 0x236   : > { %v1430_v28 = vmul.f32 0.01, %v1307_v56  ;;  %vm1398_vm14 = vcmp.gt.f32.partialorder %v1307_v56, 0.0 }
 0x237   : > { %v1475_v48 = vsel %vm1411_vm1, %v1346_v51, %v1443_v21  ;;  %v1301_v36 = vadd.f32 %v3646_v61, %v1188_v12  ;;  %v1492_v61 = vld [vmem:[%s4428_s5] sm:$0xff] }
 0x238   : > { %v3801_v15 = vpop.f32.mrf.mxu1  ;;  %1748 = vmatpush.msrb.mxu3 %v1475_v48  ;;  %v1431_v48 = vmul.f32 0.01, %v1310_v5  ;;  %v1462_v34 = vsel %vm1398_vm14, %v1307_v56, %v1430_v28 }
 0x239   : > { %vm1396_vm0 = vcmp.gt.f32.partialorder %v1301_v36, 0.0 }
 0x23a   : > { %1749 = vmatpush.msrb.mxu3 %v1474_v32  ;;  %v1463_v27 = vsel %vm1399_vm13, %v1310_v5, %v1431_v48 }
 0x23b   : > { %v3809_v31 = vpop.f32.mrf.mxu2  ;;  %v1018_v51 = vpop.permute.xlu2 %1017 }
 0x23c   : > { %1750 = vmatpush.msrb.mxu3 %v1473_v44  ;;  %v1191_v24 = vadd.f32 %v3661_v19, %v1018_v51  ;;  %v1465_v19 = vsel %vm1401_vm11, %v1316_v14, %v1433_v58 }
 0x23e   : > { %1751 = vmatpush.msrb.mxu3 %v1472_v63  ;;  %v1304_v47 = vadd.f32 %v3656_v20, %v1191_v24  ;;  %v1428_v20 = vmul.f32 0.01, %v1301_v36 }
 0x240   : > { %v3819_v52 = vpop.f32.mrf.mxu1  ;;  %1752 = vmatpush.msrb.mxu3 %v1471_v26  ;;  %v1429_v0 = vmul.f32 0.01, %v1304_v47  ;;  %vm1397_vm15 = vcmp.gt.f32.partialorder %v1304_v47, 0.0  ;;  %v1460_v44 = vsel %vm1396_vm0, %v1301_v36, %v1428_v20 }
 0x242   : > { %1753 = vmatpush.msrb.mxu3 %v1470_v41  ;;  %v1461_v45 = vsel %vm1397_vm15, %v1304_v47, %v1429_v0 }
 0x243   : > { %v3825_v35 = vpop.f32.mrf.mxu2 }
 0x244   : > { %1754 = vmatpush.msrb.mxu3 %v1469_v54 }
 0x246   : > { %1755 = vmatpush.msrb.mxu3 %v1468_v29  ;;  %v1504_v29 = vld [vmem:[%s4428_s5 + $0x60] sm:$0xff] }
 0x248   : > { %v3831_v21 = vpop.f32.mrf.mxu1  ;;  %1756 = vmatpush.msrb.mxu3 %v1467_v30  ;;  %v1508_v30 = vld [vmem:[%s4428_s5 + $0x80] sm:$0xff] }
 0x24a   : > { %1757 = vmatpush.msrb.mxu3 %v1466_v50  ;;  %v1512_v50 = vld [vmem:[%s4428_s5 + $0xa0] sm:$0xff] }
 0x24b   : > { %v3836_v49 = vpop.f32.mrf.mxu2 }
 0x24c   : > { %1758 = vmatpush.msrb.mxu3 %v1465_v19  ;;  %v1514_v19 = vld [vmem:[%s4428_s5 + $0xb0] sm:$0xff] }
 0x24e   : > { %1759 = vmatpush.msrb.mxu3 %v1464_v23 }
 0x250   : > { %v3839_v32 = vpop.f32.mrf.mxu1  ;;  %1760 = vmatpush.msrb.mxu3 %v1463_v27 }
 0x252   : > { %1761 = vmatpush.msrb.mxu3 %v1462_v34 }
 0x253   : > { %v3841_v40 = vpop.f32.mrf.mxu2 }
 0x254   : > { %1762 = vmatpush.msrb.mxu3 %v1461_v45 }
 0x256   : > { %1763 = vmatpush.msrb.mxu3 %v1460_v44  ;;  %v1118_v44 = vpop.permute.xlu0 %1117 }
 0x257   : > { %1764 = vmatmul.f32.vlgmr.msrb.gmra.mxu3 %v1492_v61 }
 0x258   : > { %v3846_v46 = vpop.f32.mrf.mxu1 }
 0x25b   : > { %v3848_v4 = vpop.f32.mrf.mxu2 }
 0x25f   : > { %1767 = vmatmul.f32.gmra.mxu3 %v1494_v39 }
 0x260   : > { %v3853_v63 = vpop.f32.mrf.mxu1 }
 0x263   : > { %v3855_v25 = vpop.f32.mrf.mxu2 }
 0x267   : > { %1770 = vmatmul.f32.gmra.mxu3 %v1496_v18 }
 0x268   : > { %v3860_v8 = vpop.f32.mrf.mxu1 }
 0x26b   : > { %v1369_v26 = vpop.f32.mrf.mxu2 }
 0x26f   : > { %1773 = vmatmul.f32.gmra.mxu3 %v1498_v55 }
 0x270   : > { %v1256_v13 = vpop.f32.mrf.mxu1 }
 0x271   : > { %v1257_v57 = vadd.f32 %v1256_v13, %v3811_v9 }
 0x273   : > { %v3866_v41 = vadd.f32 %v1369_v26, %v1257_v57  ;;  %v1372_v16 = vpop.f32.mrf.mxu2 }
 0x275   : > { %vm1419_vm9 = vcmp.gt.f32.partialorder %v3866_v41, 0.0 }
 0x277   : > { %1776 = vmatmul.f32.gmra.mxu3 %v1500_v22 }
 0x278   : > { %v1259_v14 = vpop.f32.mrf.mxu1 }
 0x279   : > { %v1260_v54 = vadd.f32 %v1259_v14, %v3805_v10  ;;  %v1506_v10 = vld [vmem:[%s4428_s5 + $0x70] sm:$0xff] }
 0x27b   : > { %v3872_v3 = vadd.f32 %v1372_v16, %v1260_v54  ;;  %v1375_v38 = vpop.f32.mrf.mxu2  ;;  %v1113_v54 = vpop.permute.xlu2 %1112 }
 0x27d   : > { %vm1420_vm8 = vcmp.gt.f32.partialorder %v3872_v3, 0.0 }
 0x27f   : > { %1779 = vmatmul.f32.gmra.mxu3 %v1502_v17  ;;  %v1254_v17 = vadd.f32 %v3860_v8, %v3815_v62 }
 0x280   : > { %v1262_v9 = vpop.f32.mrf.mxu1 }
 0x283   : > { %v1378_v2 = vpop.f32.mrf.mxu2 }
 0x287   : > { %1782 = vmatmul.f32.gmra.mxu3 %v1504_v29 }
 0x288   : > { %v1265_v42 = vpop.f32.mrf.mxu1 }
 0x289   : > { %v1266_v39 = vadd.f32 %v1265_v42, %v3787_v7  ;;  %v1251_v42 = vadd.f32 %v3853_v63, %v1118_v44 }
 0x28b   : > { %v1381_v51 = vpop.f32.mrf.mxu2  ;;  %v1379_v13 = vadd.f32 %v1378_v2, %v1266_v39  ;;  %v1108_v2 = vpop.permute.xlu0 %1107  ;;  %v1364_v8 = vadd.f32 %v3848_v4, %v1251_v42  ;;  %v1526_v39 = vld [vmem:[%s4428_s5 + $0x110] sm:$0xff]  ;;  %v1507_v42 = vld [vmem:[%s4428_s5 + $0x78] sm:$0xff] }
 0x28c   : > { %v1245_v62 = vadd.f32 %v3839_v32, %v1108_v2  ;;  %v1538_v2 = vld [vmem:[%s4428_s5 + $0x170] sm:$0xff] }
 0x28d   : > { %v1454_v29 = vmul.f32 0.01, %v1379_v13  ;;  %vm1422_vm6 = vcmp.gt.f32.partialorder %v1379_v13, 0.0  ;;  %vm1417_vm11 = vcmp.gt.f32.partialorder %v1364_v8, 0.0 }
 0x28f   : > { %1785 = vmatmul.f32.gmra.mxu3 %v1506_v10  ;;  %v1248_v10 = vadd.f32 %v3846_v46, %v1113_v54  ;;  %v1520_v46 = vld [vmem:[%s4428_s5 + $0xe0] sm:$0xff]  ;;  %v1501_v54 = vld [vmem:[%s4428_s5 + $0x48] sm:$0xff] }
 0x290   : > { %v1268_v24 = vpop.f32.mrf.mxu1 }
 0x291   : > { %v1269_v20 = vadd.f32 %v1268_v24, %v3785_v1  ;;  %v1367_v24 = vadd.f32 %v3855_v25, %v1254_v17  ;;  %v1503_v17 = vld [vmem:[%s4428_s5 + $0x58] sm:$0xff] }
 0x293   : > { %v1384_v5 = vpop.f32.mrf.mxu2  ;;  %v1382_v55 = vadd.f32 %v1381_v51, %v1269_v20  ;;  %v1450_v32 = vmul.f32 0.01, %v1367_v24  ;;  %vm1418_vm10 = vcmp.gt.f32.partialorder %v1367_v24, 0.0 }
 0x295   : > { %v1455_v14 = vmul.f32 0.01, %v1382_v55  ;;  %vm1423_vm5 = vcmp.gt.f32.partialorder %v1382_v55, 0.0 }
 0x297   : > { %1788 = vmatmul.f32.gmra.mxu3 %v1508_v30  ;;  %v1452_v30 = vmul.f32 0.01, %v3872_v3 }
 0x298   : > { %v1271_v58 = vpop.f32.mrf.mxu1 }
 0x299   : > { %v1272_v27 = vadd.f32 %v1271_v58, %v3771_v33  ;;  %v1263_v33 = vadd.f32 %v1262_v9, %v3792_v11  ;;  %v1518_v11 = vld [vmem:[%s4428_s5 + $0xd0] sm:$0xff]  ;;  %v1451_v58 = vmul.f32 0.01, %v3866_v41 }
 0x29b   : > { %v1387_v12 = vpop.f32.mrf.mxu2  ;;  %v1376_v16 = vadd.f32 %v1375_v38, %v1263_v33  ;;  %v1487_v38 = vsel %vm1423_vm5, %v1382_v55, %v1455_v14  ;;  %v1532_v14 = vld [vmem:[%s4428_s5 + $0x140] sm:$0xff] }
 0x29d   : > { %v1453_v51 = vmul.f32 0.01, %v1376_v16  ;;  %vm1421_vm7 = vcmp.gt.f32.partialorder %v1376_v16, 0.0 }
 0x29f   : > { %1791 = vmatmul.f32.gmra.mxu3 %v1510_v60  ;;  %v1485_v63 = vsel %vm1421_vm7, %v1376_v16, %v1453_v51  ;;  %v1103_v60 = vpop.permute.xlu1 %1102  ;;  %v1509_v51 = vld [vmem:[%s4428_s5 + $0x88] sm:$0xff] }
 0x2a0   : > { %v1274_v56 = vpop.f32.mrf.mxu1  ;;  %v1242_v25 = vadd.f32 %v3831_v21, %v1103_v60  ;;  %v1517_v60 = vld [vmem:[%s4428_s5 + $0xc8] sm:$0xff] }
 0x2a1   : > { %v1275_v36 = vadd.f32 %v1274_v56, %v3766_v59  ;;  %v1385_v59 = vadd.f32 %v1384_v5, %v1272_v27  ;;  %v1486_v5 = vsel %vm1422_vm6, %v1379_v13, %v1454_v29  ;;  %v1484_v56 = vsel %vm1420_vm8, %v3872_v3, %v1452_v30  ;;  %v1530_v13 = vld [vmem:[%s4428_s5 + $0x130] sm:$0xff]  ;;  %v1505_v29 = vld [vmem:[%s4428_s5 + $0x68] sm:$0xff] }
 0x2a2   : > { %v1482_v3 = vsel %vm1418_vm10, %v1367_v24, %v1450_v32  ;;  %v1511_v24 = vld [vmem:[%s4428_s5 + $0x98] sm:$0xff]  ;;  %v1513_v30 = vld [vmem:[%s4428_s5 + $0xa8] sm:$0xff] }
 0x2a3   : > { %v1390_v43 = vpop.f32.mrf.mxu2  ;;  %v1388_v45 = vadd.f32 %v1387_v12, %v1275_v36  ;;  %v1456_v7 = vmul.f32 0.01, %v1385_v59  ;;  %vm1424_vm4 = vcmp.gt.f32.partialorder %v1385_v59, 0.0  ;;  %v1361_v12 = vadd.f32 %v3841_v40, %v1248_v10  ;;  %v1542_v10 = vld [vmem:[%s4428_s5 + $0x190] sm:$0xff]  ;;  %v1521_v32 = vld [vmem:[%s4428_s5 + $0xe8] sm:$0xff] }
 0x2a4   : > { %v1355_v40 = vadd.f32 %v3825_v35, %v1242_v25  ;;  %v1550_v25 = vld [vmem:[%s4428_s5 + $0x1d0] sm:$0xff] }
 0x2a5   : > { %v1457_v1 = vmul.f32 0.01, %v1388_v45  ;;  %vm1425_vm3 = vcmp.gt.f32.partialorder %v1388_v45, 0.0  ;;  %v1488_v9 = vsel %vm1424_vm4, %v1385_v59, %v1456_v7  ;;  %v1448_v36 = vmul.f32 0.01, %v1361_v12 }
 0x2a6   : > { %vm1416_vm12 = vcmp.gt.f32.partialorder %v1361_v12, 0.0  ;;  %vm1414_vm14 = vcmp.gt.f32.partialorder %v1355_v40, 0.0 }
 0x2a7   : > { %1794 = vmatmul.f32.gmra.mxu3 %v1512_v50  ;;  %v1489_v22 = vsel %vm1425_vm3, %v1388_v45, %v1457_v1  ;;  %v1098_v50 = vpop.permute.xlu2 %1097  ;;  %v1480_v27 = vsel %vm1416_vm12, %v1361_v12, %v1448_v36  ;;  %v1524_v45 = vld [vmem:[%s4428_s5 + $0x100] sm:$0xff]  ;;  %v3957_v33 = vpop.permute.xlu1 %1590  ;;  %v1519_v12 = vld [vmem:[%s4428_s5 + $0xd8] sm:$0xff] }
 0x2a8   : > { %v1277_v47 = vpop.f32.mrf.mxu1  ;;  %v1239_v4 = vadd.f32 %v3819_v52, %v1098_v50 }
 0x2a9   : > { %v1278_v48 = vadd.f32 %v1277_v47, %v3764_v37  ;;  %v1516_v37 = vld [vmem:[%s4428_s5 + $0xc0] sm:$0xff]  ;;  %v1483_v47 = vsel %vm1419_vm9, %v3866_v41, %v1451_v58 }
 0x2aa   : > { %v1548_v58 = vld [vmem:[%s4428_s5 + $0x1c0] sm:$0xff] }
 0x2ab   : > { %v1393_v28 = vpop.f32.mrf.mxu2  ;;  %v1391_v0 = vadd.f32 %v1390_v43, %v1278_v48  ;;  %v1358_v43 = vadd.f32 %v3836_v49, %v1245_v62  ;;  %v1093_v48 = vpop.permute.xlu0 %1092  ;;  %v1522_v49 = vld [vmem:[%s4428_s5 + $0xf0] sm:$0xff] }
 0x2ac   : > { %v1236_v21 = vadd.f32 %v3801_v15, %v1093_v48  ;;  %v1446_v15 = vmul.f32 0.01, %v1355_v40  ;;  %v1546_v62 = vld [vmem:[%s4428_s5 + $0x1b0] sm:$0xff]  ;;  %v1525_v48 = vld [vmem:[%s4428_s5 + $0x108] sm:$0xff] }
 0x2ad   : > { %v1458_v26 = vmul.f32 0.01, %v1391_v0  ;;  %vm1426_vm2 = vcmp.gt.f32.partialorder %v1391_v0, 0.0  ;;  %vm1415_vm13 = vcmp.gt.f32.partialorder %v1358_v43, 0.0 }
 0x2ae   : > { %v1349_v41 = vadd.f32 %v3798_v6, %v1236_v21  ;;  %v1493_v6 = vld [vmem:[%s4428_s5 + $0x8] sm:$0xff] }
 0x2af   : > { %1797 = vmatmul.f32.gmra.mxu3 %v1514_v19  ;;  %v1490_v57 = vsel %vm1426_vm2, %v1391_v0, %v1458_v26  ;;  %v1449_v19 = vmul.f32 0.01, %v1364_v8  ;;  %v1497_v26 = vld [vmem:[%s4428_s5 + $0x28] sm:$0xff]  ;;  %v1606_v7 = vpop.permute.xlu1 %1605 }
 0x2b0   : > { %v1280_v23 = vpop.f32.mrf.mxu1  ;;  %vm1412_vm0 = vcmp.gt.f32.partialorder %v1349_v41, 0.0 }
 0x2b1   : > { %v1281_v34 = vadd.f32 %v1280_v23, %v3748_v53  ;;  %v1352_v23 = vadd.f32 %v3809_v31, %v1239_v4  ;;  %v1481_v52 = vsel %vm1417_vm11, %v1364_v8, %v1449_v19  ;;  %v1478_v31 = vsel %vm1414_vm14, %v1355_v40, %v1446_v15  ;;  %v1515_v8 = vld [vmem:[%s4428_s5 + $0xb8] sm:$0xff]  ;;  %v1554_v4 = vld [vmem:[%s4428_s5 + $0x1f0] sm:$0xff]  ;;  %v1533_v15 = vld [vmem:[%s4428_s5 + $0x148] sm:$0xff] }
 0x2b2   : > { %v1527_v40 = vld [vmem:[%s4428_s5 + $0x118] sm:$0xff] }
 0x2b3   : > { %v1394_v61 = vadd.f32 %v1393_v28, %v1281_v34  ;;  %v1447_v28 = vmul.f32 0.01, %v1358_v43  ;;  %v1445_v0 = vmul.f32 0.01, %v1352_v23  ;;  %vm1413_vm15 = vcmp.gt.f32.partialorder %v1352_v23, 0.0  ;;  %v1601_v55 = vpop.permute.xlu0 %1600 }
 0x2b4   : > { %v1444_v34 = vmul.f32 0.01, %v1349_v41 }
 0x2b5   : > { %vm1427_vm1 = vcmp.gt.f32.partialorder %v1394_v61, 0.0  ;;  %v1459_v18 = vmul.f32 0.01, %v1394_v61  ;;  %v1479_v35 = vsel %vm1415_vm13, %v1358_v43, %v1447_v28  ;;  %v1477_v20 = vsel %vm1413_vm15, %v1352_v23, %v1445_v0  ;;  %v1523_v43 = vld [vmem:[%s4428_s5 + $0xf8] sm:$0xff]  ;;  %v1529_v23 = vld [vmem:[%s4428_s5 + $0x128] sm:$0xff] }
 0x2b7   : > { %1800 = vmatmul.f32.gmra.mxu3 %v1516_v37  ;;  %v1491_v53 = vsel %vm1427_vm1, %v1394_v61, %v1459_v18  ;;  %v1476_v61 = vsel %vm1412_vm0, %v1349_v41, %v1444_v34  ;;  %v1495_v37 = vld [vmem:[%s4428_s5 + $0x18] sm:$0xff]  ;;  %v1528_v18 = vld [vmem:[%s4428_s5 + $0x120] sm:$0xff]  ;;  %v4073_v41 = vpop.permute.xlu2 %1595 }
 0x2b8   : > { %1861 = vmatpush.msrb.mxu0 %v1491_v53  ;;  %v1535_v34 = vld [vmem:[%s4428_s5 + $0x158] sm:$0xff] }
 0x2ba   : > { %1862 = vmatpush.msrb.mxu0 %v1490_v57  ;;  %v1499_v57 = vld [vmem:[%s4428_s5 + $0x38] sm:$0xff] }
 0x2bc   : > { %1863 = vmatpush.msrb.mxu0 %v1489_v22 }
 0x2be   : > { %1864 = vmatpush.msrb.mxu0 %v1488_v9  ;;  %v1536_v9 = vld [vmem:[%s4428_s5 + $0x160] sm:$0xff] }
 0x2bf   : > { %1803 = vmatmul.f32.gmra.mxu3 %v1518_v11  ;;  %v1534_v11 = vld [vmem:[%s4428_s5 + $0x150] sm:$0xff]  ;;  %v4082_v0 = vpop.permute.xlu2 %1610 }
 0x2c0   : > { %1865 = vmatpush.msrb.mxu0 %v1487_v38  ;;  %v1540_v38 = vld [vmem:[%s4428_s5 + $0x180] sm:$0xff] }
 0x2c2   : > { %1866 = vmatpush.msrb.mxu0 %v1486_v5  ;;  %v1544_v5 = vld [vmem:[%s4428_s5 + $0x1a0] sm:$0xff] }
 0x2c4   : > { %1867 = vmatpush.msrb.mxu0 %v1485_v63 }
 0x2c6   : > { %1868 = vmatpush.msrb.mxu0 %v1484_v56  ;;  %v1552_v56 = vld [vmem:[%s4428_s5 + $0x1e0] sm:$0xff] }
 0x2c7   : > { %1806 = vmatmul.f32.gmra.mxu3 %v1520_v46 }
 0x2c8   : > { %1869 = vmatpush.msrb.mxu0 %v1483_v47 }
 0x2ca   : > { %1870 = vmatpush.msrb.mxu0 %v1482_v3 }
 0x2cc   : > { %1871 = vmatpush.msrb.mxu0 %v1481_v52 }
 0x2ce   : > { %1872 = vmatpush.msrb.mxu0 %v1480_v27 }
 0x2cf   : > { %1809 = vmatmul.f32.gmra.mxu3 %v1522_v49  ;;  %v1531_v49 = vld [vmem:[%s4428_s5 + $0x138] sm:$0xff] }
 0x2d0   : > { %1873 = vmatpush.msrb.mxu0 %v1479_v35 }
 0x2d2   : > { %1874 = vmatpush.msrb.mxu0 %v1478_v31 }
 0x2d4   : > { %1875 = vmatpush.msrb.mxu0 %v1477_v20 }
 0x2d6   : > { %1876 = vmatpush.msrb.mxu0 %v1476_v61  ;;  %v1537_v61 = vld [vmem:[%s4428_s5 + $0x168] sm:$0xff] }
 0x2d7   : > { %1812 = vmatmul.f32.gmra.mxu3 %v1524_v45  ;;  %1877 = vmatmul.f32.vlgmr.msrb.gmra.mxu0 %v1493_v6  ;;  %v4091_v45 = vpop.permute.xlu2 %1625 }
 0x2da   : > { %v3941_v44 = vpop.f32.mrf.mxu3 }
 0x2df   : > { %1815 = vmatmul.f32.gmra.mxu3 %v1526_v39  ;;  %1880 = vmatmul.f32.gmra.mxu0 %v1495_v37  ;;  %v4098_v39 = vpop.permute.xlu1 %1620 }
 0x2e2   : > { %v3949_v59 = vpop.f32.mrf.mxu3 }
 0x2e7   : > { %1818 = vmatmul.f32.gmra.mxu3 %v1528_v18  ;;  %1883 = vmatmul.f32.gmra.mxu0 %v1497_v26  ;;  %v1666_v18 = vpop.permute.xlu2 %1665 }
 0x2ea   : > { %v1771_v53 = vpop.f32.mrf.mxu3 }
 0x2eb   : > { %v3959_v1 = vadd.f32 %v1771_v53, %v1601_v55  ;;  %v1539_v55 = vld [vmem:[%s4428_s5 + $0x178] sm:$0xff]  ;;  %v4105_v53 = vpop.permute.xlu0 %1615 }
 0x2ef   : > { %1821 = vmatmul.f32.gmra.mxu3 %v1530_v13  ;;  %1886 = vmatmul.f32.gmra.mxu0 %v1499_v57  ;;  %v4107_v13 = vpop.permute.xlu1 %1740 }
 0x2f0   : > { %4437 = vst [vmem:[#allocation6_spill] sm:$0xff] %v4107_v13 }
 0x2f2   : > { %v1774_v16 = vpop.f32.mrf.mxu3 }
 0x2f3   : > { %v3967_v22 = vadd.f32 %v1774_v16, %v1606_v7  ;;  %v1541_v16 = vld [vmem:[%s4428_s5 + $0x188] sm:$0xff] }
 0x2f7   : > { %1824 = vmatmul.f32.gmra.mxu3 %v1532_v14  ;;  %1889 = vmatmul.f32.gmra.mxu0 %v1501_v54  ;;  %v4114_v14 = vpop.permute.xlu2 %1730  ;;  %v4116_v54 = vpop.permute.xlu0 %1745 }
 0x2f8   : > { %4438 = vst [vmem:[#allocation7_spill] sm:$0xff] %v4114_v14 }
 0x2f9   : > { %4439 = vst [vmem:[#allocation8_spill] sm:$0xff] %v4116_v54 }
 0x2fa   : > { %v4017_v63 = vpop.f32.mrf.mxu3 }
 0x2ff   : > { %1827 = vmatmul.f32.gmra.mxu3 %v1534_v11  ;;  %1892 = vmatmul.f32.gmra.mxu0 %v1503_v17  ;;  %v1543_v17 = vld [vmem:[%s4428_s5 + $0x198] sm:$0xff] }
 0x302   : > { %v4025_v46 = vpop.f32.mrf.mxu3 }
 0x307   : > { %1830 = vmatmul.f32.gmra.mxu3 %v1536_v9  ;;  %1895 = vmatmul.f32.gmra.mxu0 %v1505_v29  ;;  %v1661_v9 = vpop.permute.xlu1 %1660 }
 0x30a   : > { %v4039_v50 = vpop.f32.mrf.mxu3 }
 0x30f   : > { %1833 = vmatmul.f32.gmra.mxu3 %v1538_v2  ;;  %1898 = vmatmul.f32.gmra.mxu0 %v1507_v42  ;;  %v1651_v2 = vpop.permute.xlu2 %1650 }
 0x312   : > { %v4047_v47 = vpop.f32.mrf.mxu3 }
 0x317   : > { %1836 = vmatmul.f32.gmra.mxu3 %v1540_v38  ;;  %1901 = vmatmul.f32.gmra.mxu0 %v1509_v51  ;;  %v1545_v38 = vld [vmem:[%s4428_s5 + $0x1a8] sm:$0xff]  ;;  %v4126_v51 = vpop.permute.xlu0 %1735 }
 0x318   : > { %4440 = vst [vmem:[#allocation9_spill] sm:$0xff] %v4126_v51 }
 0x31a   : > { %v4059_v3 = vpop.f32.mrf.mxu3 }
 0x31f   : > { %1839 = vmatmul.f32.gmra.mxu3 %v1542_v10  ;;  %1904 = vmatmul.f32.gmra.mxu0 %v1511_v24  ;;  %v4128_v10 = vpop.permute.xlu1 %1725 }
 0x320   : > { %4441 = vst [vmem:[#allocation10_spill] sm:$0xff] %v4128_v10 }
 0x322   : > { %v4066_v52 = vpop.f32.mrf.mxu3 }
 0x327   : > { %1842 = vmatmul.f32.gmra.mxu3 %v1544_v5  ;;  %1907 = vmatmul.f32.gmra.mxu0 %v1513_v30  ;;  %v4130_v5 = vpop.permute.xlu2 %1715 }
 0x328   : > { %4442 = vst [vmem:[#allocation11_spill] sm:$0xff] %v4130_v5 }
 0x32a   : > { %v4080_v35 = vpop.f32.mrf.mxu3 }
 0x32f   : > { %1845 = vmatmul.f32.gmra.mxu3 %v1546_v62  ;;  %1910 = vmatmul.f32.gmra.mxu0 %v1515_v8  ;;  %v1547_v62 = vld [vmem:[%s4428_s5 + $0x1b8] sm:$0xff]  ;;  %v1656_v8 = vpop.permute.xlu0 %1655 }
 0x332   : > { %v4089_v20 = vpop.f32.mrf.mxu3 }
 0x337   : > { %1848 = vmatmul.f32.gmra.mxu3 %v1548_v58  ;;  %1913 = vmatmul.f32.gmra.mxu0 %v1517_v60  ;;  %v1646_v58 = vpop.permute.xlu1 %1645 }
 0x338   : > { %v1799_v51 = vadd.f32 %v4089_v20, %v1646_v58 }
 0x33a   : > { %v1801_v37 = vpop.f32.mrf.mxu3 }
 0x33f   : > { %1851 = vmatmul.f32.gmra.mxu3 %v1550_v25  ;;  %1916 = vmatmul.f32.gmra.mxu0 %v1519_v12  ;;  %v1636_v25 = vpop.permute.xlu2 %1635 }
 0x342   : > { %v1804_v57 = vpop.f32.mrf.mxu3 }
 0x347   : > { %1854 = vmatmul.f32.gmra.mxu3 %v1552_v56  ;;  %1919 = vmatmul.f32.gmra.mxu0 %v1521_v32  ;;  %v1549_v56 = vld [vmem:[%s4428_s5 + $0x1c8] sm:$0xff]  ;;  %v4138_v32 = vpop.permute.xlu0 %1720 }
 0x348   : > { %4443 = vst [vmem:[#allocation12_spill] sm:$0xff] %v4138_v32  ;;  %v1802_v32 = vadd.f32 %v1801_v37, %v1651_v2 }
 0x34a   : > { %v1807_v29 = vpop.f32.mrf.mxu3 }
 0x34f   : > { %1857 = vmatmul.f32.gmra.mxu3 %v1554_v4  ;;  %1922 = vmatmul.f32.gmra.mxu0 %v1523_v43  ;;  %v4140_v4 = vpop.permute.xlu1 %1710 }
 0x352   : > { %v1810_v24 = vpop.f32.mrf.mxu3 }
 0x354   : > { %v4049_v19 = vpop.f32.mrf.mxu0 }
 0x357   : > { %1925 = vmatmul.f32.gmra.mxu0 %v1525_v48 }
 0x35a   : > { %v1813_v60 = vpop.f32.mrf.mxu3 }
 0x35c   : > { %v4054_v21 = vpop.f32.mrf.mxu0 }
 0x35f   : > { %1928 = vmatmul.f32.gmra.mxu0 %v1527_v40  ;;  %v1551_v40 = vld [vmem:[%s4428_s5 + $0x1d8] sm:$0xff] }
 0x362   : > { %v4142_v43 = vpop.f32.mrf.mxu3 }
 0x364   : > { %v4061_v36 = vpop.f32.mrf.mxu0 }
 0x367   : > { %1931 = vmatmul.f32.gmra.mxu0 %v1529_v23  ;;  %v4147_v23 = vpop.permute.xlu2 %1700 }
 0x36c   : > { %v4068_v28 = vpop.f32.mrf.mxu0 }
 0x36f   : > { %1934 = vmatmul.f32.gmra.mxu0 %v1531_v49  ;;  %v1641_v49 = vpop.permute.xlu0 %1640 }
 0x374   : > { %v4075_v27 = vpop.f32.mrf.mxu0 }
 0x377   : > { %1937 = vmatmul.f32.gmra.mxu0 %v1533_v15  ;;  %v4159_v54 = vpop.permute.xlu0 %1705 }
 0x37c   : > { %v4084_v31 = vpop.f32.mrf.mxu0 }
 0x37f   : > { %1940 = vmatmul.f32.gmra.mxu0 %v1535_v34  ;;  %v1553_v34 = vld [vmem:[%s4428_s5 + $0x1e8] sm:$0xff] }
 0x384   : > { %v4093_v6 = vpop.f32.mrf.mxu0 }
 0x387   : > { %1943 = vmatmul.f32.gmra.mxu0 %v1537_v61  ;;  %v1631_v61 = vpop.permute.xlu1 %1630 }
 0x38c   : > { %v4100_v26 = vpop.f32.mrf.mxu0 }
 0x38f   : > { %1946 = vmatmul.f32.gmra.mxu0 %v1539_v55  ;;  %v4152_v55 = vpop.f32.mrf.mxu3 }
 0x394   : > { %v4109_v7 = vpop.f32.mrf.mxu0 }
 0x397   : > { %1949 = vmatmul.f32.gmra.mxu0 %v1541_v16  ;;  %v4154_v16 = vpop.permute.xlu2 %1685 }
 0x39c   : > { %v4118_v11 = vpop.f32.mrf.mxu0 }
 0x39f   : > { %1952 = vmatmul.f32.gmra.mxu0 %v1543_v17  ;;  %v1808_v17 = vadd.f32 %v1807_v29, %v1661_v9  ;;  %v1796_v29 = vadd.f32 %v4080_v35, %v1641_v49 }
 0x3a4   : > { %v1908_v42 = vpop.f32.mrf.mxu0 }
 0x3a5   : > { %v1909_v58 = vadd.f32 %v1908_v42, %v1796_v29 }
 0x3a7   : > { %1955 = vmatmul.f32.gmra.mxu0 %v1545_v38  ;;  %v1805_v38 = vadd.f32 %v1804_v57, %v1656_v8  ;;  %v4162_v57 = vpop.permute.xlu1 %1690  ;;  %v1793_v8 = vadd.f32 %v4066_v52, %v1636_v25  ;;  %v1787_v52 = vadd.f32 %v4047_v47, %v4091_v45  ;;  %v4175_v25 = vpop.permute.xlu0 %1695  ;;  %vm1984_vm6 = vcmp.gt.f32.partialorder %v1909_v58, 0.0 }
 0x3a8   : > { %v1781_v47 = vadd.f32 %v4025_v46, %v4105_v53 }
 0x3a9   : > { %v1906_v35 = vadd.f32 %v4118_v11, %v1793_v8  ;;  %v1784_v11 = vadd.f32 %v4039_v50, %v4098_v39  ;;  %v1778_v50 = vadd.f32 %v4017_v63, %v4082_v0  ;;  %v1888_v63 = vadd.f32 %v4068_v28, %v3967_v22 }
 0x3aa   : > { %v1894_v46 = vadd.f32 %v4084_v31, %v1781_v47  ;;  %v2076_v47 = vld [vmem:[%s4430_s7 + $0x30] sm:$0xff] }
 0x3ab   : > { %vm1983_vm7 = vcmp.gt.f32.partialorder %v1906_v35, 0.0  ;;  %v2009_v8 = vmul.f32 0.01, %v1888_v63  ;;  %vm1977_vm13 = vcmp.gt.f32.partialorder %v1888_v63, 0.0 }
 0x3ac   : > { %v1911_v30 = vpop.f32.mrf.mxu0  ;;  %vm1979_vm11 = vcmp.gt.f32.partialorder %v1894_v46, 0.0 }
 0x3af   : > { %1958 = vmatmul.f32.gmra.mxu0 %v1547_v62  ;;  %v1811_v62 = vadd.f32 %v1810_v24, %v1666_v18  ;;  %v4164_v18 = vpop.f32.mrf.mxu3  ;;  %v1912_v24 = vadd.f32 %v1911_v30, %v1799_v51  ;;  %v1681_v31 = vpop.permute.xlu0 %1680 }
 0x3b0   : > { %v1820_v29 = vadd.f32 %v4152_v55, %v1681_v31  ;;  %v2088_v31 = vld [vmem:[%s4430_s7 + $0x90] sm:$0xff] }
 0x3b1   : > { %v2017_v30 = vmul.f32 0.01, %v1912_v24  ;;  %vm1985_vm5 = vcmp.gt.f32.partialorder %v1912_v24, 0.0 }
 0x3b3   : > { %v2049_v49 = vsel %vm1985_vm5, %v1912_v24, %v2017_v30 }
 0x3b4   : > { %v1914_v12 = vpop.f32.mrf.mxu0 }
 0x3b5   : > { %v1915_v13 = vadd.f32 %v1914_v12, %v1802_v32 }
 0x3b7   : > { %1961 = vmatmul.f32.gmra.mxu0 %v1549_v56  ;;  %v2018_v32 = vmul.f32 0.01, %v1915_v13  ;;  %vm1986_vm4 = vcmp.gt.f32.partialorder %v1915_v13, 0.0  ;;  %v4182_v45 = vpop.f32.mrf.mxu3 }
 0x3bc   : > { %v1917_v48 = vpop.f32.mrf.mxu0 }
 0x3bd   : > { %v1918_v10 = vadd.f32 %v1917_v48, %v1805_v38  ;;  %v1790_v48 = vadd.f32 %v4059_v3, %v1631_v61  ;;  %v2016_v3 = vmul.f32 0.01, %v1909_v58  ;;  %v2015_v61 = vmul.f32 0.01, %v1906_v35 }
 0x3bf   : > { %1964 = vmatmul.f32.gmra.mxu0 %v1551_v40  ;;  %v1555_v40 = vld [vmem:[%s4428_s5 + $0x1f8] sm:$0xff]  ;;  %v2019_v2 = vmul.f32 0.01, %v1918_v10  ;;  %vm1987_vm3 = vcmp.gt.f32.partialorder %v1918_v10, 0.0  ;;  %v1903_v42 = vadd.f32 %v4109_v7, %v1790_v48  ;;  %v1897_v7 = vadd.f32 %v4093_v6, %v1784_v11  ;;  %v1828_v22 = vpop.f32.mrf.mxu3 }
 0x3c0   : > { %v2048_v38 = vsel %vm1984_vm6, %v1909_v58, %v2016_v3  ;;  %v2047_v53 = vsel %vm1983_vm7, %v1906_v35, %v2015_v61  ;;  %v1891_v6 = vadd.f32 %v4075_v27, %v1778_v50  ;;  %v1885_v27 = vadd.f32 %v4061_v36, %v3959_v1 }
 0x3c1   : > { %v2051_v51 = vsel %vm1987_vm3, %v1918_v10, %v2019_v2  ;;  %v1900_v10 = vadd.f32 %v4100_v26, %v1787_v52  ;;  %vm1982_vm8 = vcmp.gt.f32.partialorder %v1903_v42, 0.0  ;;  %vm1980_vm10 = vcmp.gt.f32.partialorder %v1897_v7, 0.0  ;;  %v2072_v52 = vld [vmem:[%s4430_s7 + $0x10] sm:$0xff] }
 0x3c2   : > { %v1766_v2 = vadd.f32 %v3941_v44, %v3957_v33  ;;  %vm1978_vm12 = vcmp.gt.f32.partialorder %v1891_v6, 0.0  ;;  %v2008_v55 = vmul.f32 0.01, %v1885_v27  ;;  %vm1976_vm14 = vcmp.gt.f32.partialorder %v1885_v27, 0.0 }
 0x3c3   : > { %vm1981_vm9 = vcmp.gt.f32.partialorder %v1900_v10, 0.0  ;;  %v2041_v44 = vsel %vm1977_vm13, %v1888_v63, %v2009_v8  ;;  %v1826_v35 = vadd.f32 %v4182_v45, %v4162_v57  ;;  %v2086_v63 = vld [vmem:[%s4430_s7 + $0x80] sm:$0xff]  ;;  %v4446_v8 = vld [vmem:[#allocation8_spill] sm:$0xff] }
 0x3c4   : > { %v1920_v15 = vpop.f32.mrf.mxu0  ;;  %v1879_v1 = vadd.f32 %v4049_v19, %v1766_v2 }
 0x3c5   : > { %v1921_v56 = vadd.f32 %v1920_v15, %v1808_v17  ;;  %v1676_v17 = vpop.permute.xlu1 %1675 }
 0x3c6   : > { %v2006_v58 = vmul.f32 0.01, %v1879_v1  ;;  %vm1974_vm0 = vcmp.gt.f32.partialorder %v1879_v1, 0.0 }
 0x3c7   : > { %1967 = vmatmul.f32.gmra.mxu0 %v1553_v34  ;;  %v2020_v9 = vmul.f32 0.01, %v1921_v56  ;;  %vm1988_vm2 = vcmp.gt.f32.partialorder %v1921_v56, 0.0  ;;  %v1831_v48 = vpop.f32.mrf.mxu3 }
 0x3c9   : > { %v2052_v12 = vsel %vm1988_vm2, %v1921_v56, %v2020_v9  ;;  %v2013_v56 = vmul.f32 0.01, %v1900_v10  ;;  %v1769_v9 = vadd.f32 %v3949_v59, %v4073_v41 }
 0x3cb   : > { %v2045_v0 = vsel %vm1981_vm9, %v1900_v10, %v2013_v56  ;;  %v1882_v59 = vadd.f32 %v4054_v21, %v1769_v9  ;;  %v1823_v21 = vadd.f32 %v4164_v18, %v4154_v16  ;;  %v2100_v16 = vld [vmem:[%s4430_s7 + $0xf0] sm:$0xff]  ;;  %v2038_v18 = vsel %vm1974_vm0, %v1879_v1, %v2006_v58  ;;  %v2074_v10 = vld [vmem:[%s4430_s7 + $0x20] sm:$0xff] }
 0x3cc   : > { %v1923_v5 = vpop.f32.mrf.mxu0  ;;  %v4448_v58 = vld [vmem:[#allocation10_spill] sm:$0xff] }
 0x3cd   : > { %v1924_v14 = vadd.f32 %v1923_v5, %v1811_v62  ;;  %v1671_v5 = vpop.permute.xlu2 %1670  ;;  %v2014_v62 = vmul.f32 0.01, %v1903_v42  ;;  %v2007_v33 = vmul.f32 0.01, %v1882_v59  ;;  %vm1975_vm15 = vcmp.gt.f32.partialorder %v1882_v59, 0.0 }
 0x3ce   : > { %v1814_v20 = vadd.f32 %v1813_v60, %v1671_v5  ;;  %v2050_v60 = vsel %vm1986_vm4, %v1915_v13, %v2018_v32  ;;  %v1817_v13 = vadd.f32 %v4142_v43, %v1676_v17 }
 0x3cf   : > { %1970 = vmatmul.f32.gmra.mxu0 %v1555_v40  ;;  %vm1989_vm1 = vcmp.gt.f32.partialorder %v1924_v14, 0.0  ;;  %v2021_v34 = vmul.f32 0.01, %v1924_v14  ;;  %v2046_v43 = vsel %vm1982_vm8, %v1903_v42, %v2014_v62  ;;  %v2012_v40 = vmul.f32 0.01, %v1897_v7  ;;  %v1834_v42 = vpop.f32.mrf.mxu3 }
 0x3d0   : > { %v2039_v32 = vsel %vm1975_vm15, %v1882_v59, %v2007_v33  ;;  %v4445_v59 = vld [vmem:[#allocation9_spill] sm:$0xff] }
 0x3d1   : > { %v2053_v37 = vsel %vm1989_vm1, %v1924_v14, %v2021_v34  ;;  %v2011_v34 = vmul.f32 0.01, %v1894_v46  ;;  %v2044_v24 = vsel %vm1980_vm10, %v1897_v7, %v2012_v40 }
 0x3d2   : > { %2198 = vmatpush.msrb.mxu1 %v2053_v37  ;;  %2626 = vmatpush.msra.mxu3 %v2053_v37  ;;  %v2010_v37 = vmul.f32 0.01, %v1891_v6 }
 0x3d3   : > { %v2043_v5 = vsel %vm1979_vm11, %v1894_v46, %v2011_v34  ;;  %v2080_v46 = vld [vmem:[%s4430_s7 + $0x50] sm:$0xff] }
 0x3d4   : > { %v1926_v15 = vpop.f32.mrf.mxu0  ;;  %2199 = vmatpush.msrb.mxu1 %v2052_v12  ;;  %2627 = vmatpush.msra.mxu3 %v2052_v12  ;;  %v2042_v36 = vsel %vm1978_vm12, %v1891_v6, %v2010_v37  ;;  %v2092_v37 = vld [vmem:[%s4430_s7 + $0xb0] sm:$0xff] }
 0x3d5   : > { %v4170_v14 = vadd.f32 %v1926_v15, %v1814_v20  ;;  %v2040_v20 = vsel %vm1976_vm14, %v1885_v27, %v2008_v55  ;;  %v2070_v15 = vld [vmem:[%s4430_s7] sm:$0xff] }
 0x3d6   : > { %2200 = vmatpush.msrb.mxu1 %v2051_v51  ;;  %2628 = vmatpush.msra.mxu3 %v2051_v51 }
 0x3d7   : > { %v1837_v57 = vpop.f32.mrf.mxu3  ;;  %vm1990_vm0 = vcmp.gt.f32.partialorder %v4170_v14, 0.0 }
 0x3d8   : > { %2201 = vmatpush.msrb.mxu1 %v2050_v60  ;;  %2629 = vmatpush.msra.mxu3 %v2050_v60  ;;  %v1829_v60 = vadd.f32 %v1828_v22, %v4175_v25  ;;  %v1835_v25 = vadd.f32 %v1834_v42, %v4159_v54  ;;  %v4444_v22 = vld [vmem:[#allocation6_spill] sm:$0xff] }
 0x3da   : > { %2202 = vmatpush.msrb.mxu1 %v2049_v49  ;;  %2630 = vmatpush.msra.mxu3 %v2049_v49  ;;  %v1832_v49 = vadd.f32 %v1831_v48, %v4147_v23  ;;  %v1838_v23 = vadd.f32 %v1837_v57, %v4140_v4  ;;  %v2084_v4 = vld [vmem:[%s4430_s7 + $0x70] sm:$0xff] }
 0x3dc   : > { %v1929_v39 = vpop.f32.mrf.mxu0  ;;  %2203 = vmatpush.msrb.mxu1 %v2048_v38  ;;  %2631 = vmatpush.msra.mxu3 %v2048_v38  ;;  %v2078_v38 = vld [vmem:[%s4430_s7 + $0x40] sm:$0xff] }
 0x3dd   : > { %v4189_v26 = vadd.f32 %v1929_v39, %v1817_v13 }
 0x3de   : > { %2204 = vmatpush.msrb.mxu1 %v2047_v53  ;;  %2632 = vmatpush.msra.mxu3 %v2047_v53  ;;  %v2082_v53 = vld [vmem:[%s4430_s7 + $0x60] sm:$0xff] }
 0x3df   : > { %v1840_v45 = vpop.f32.mrf.mxu3  ;;  %vm1991_vm15 = vcmp.gt.f32.partialorder %v4189_v26, 0.0 }
 0x3e0   : > { %2205 = vmatpush.msrb.mxu1 %v2046_v43  ;;  %2633 = vmatpush.msra.mxu3 %v2046_v43 }
 0x3e2   : > { %2206 = vmatpush.msrb.mxu1 %v2045_v0  ;;  %2634 = vmatpush.msra.mxu3 %v2045_v0 }
 0x3e4   : > { %v1932_v28 = vpop.f32.mrf.mxu0  ;;  %2207 = vmatpush.msrb.mxu1 %v2044_v24  ;;  %2635 = vmatpush.msra.mxu3 %v2044_v24 }
 0x3e5   : > { %v4202_v41 = vadd.f32 %v1932_v28, %v1820_v29  ;;  %v2090_v29 = vld [vmem:[%s4430_s7 + $0xa0] sm:$0xff] }
 0x3e6   : > { %2208 = vmatpush.msrb.mxu1 %v2043_v5  ;;  %2636 = vmatpush.msra.mxu3 %v2043_v5 }
 0x3e7   : > { %v1843_v39 = vpop.f32.mrf.mxu3  ;;  %vm1992_vm14 = vcmp.gt.f32.partialorder %v4202_v41, 0.0 }
 0x3e8   : > { %2209 = vmatpush.msrb.mxu1 %v2042_v36  ;;  %2637 = vmatpush.msra.mxu3 %v2042_v36 }
 0x3ea   : > { %2210 = vmatpush.msrb.mxu1 %v2041_v44  ;;  %2638 = vmatpush.msra.mxu3 %v2041_v44  ;;  %v4447_v44 = vld [vmem:[#allocation7_spill] sm:$0xff] }
 0x3ec   : > { %v1935_v12 = vpop.f32.mrf.mxu0  ;;  %2211 = vmatpush.msrb.mxu1 %v2040_v20  ;;  %2639 = vmatpush.msra.mxu3 %v2040_v20 }
 0x3ed   : > { %v4207_v19 = vadd.f32 %v1935_v12, %v1823_v21 }
 0x3ee   : > { %2212 = vmatpush.msrb.mxu1 %v2039_v32  ;;  %2640 = vmatpush.msra.mxu3 %v2039_v32  ;;  %v2094_v32 = vld [vmem:[%s4430_s7 + $0xc0] sm:$0xff] }
 0x3ef   : > { %v1846_v56 = vpop.f32.mrf.mxu3  ;;  %vm1993_vm13 = vcmp.gt.f32.partialorder %v4207_v19, 0.0 }
 0x3f0   : > { %2213 = vmatpush.msrb.mxu1 %v2038_v18  ;;  %2641 = vmatpush.msra.mxu3 %v2038_v18  ;;  %v1847_v12 = vadd.f32 %v1846_v56, %v4448_v58  ;;  %v4449_v18 = vld [vmem:[#allocation12_spill] sm:$0xff]  ;;  %v2098_v56 = vld [vmem:[%s4430_s7 + $0xe0] sm:$0xff] }
 0x3f1   : > { %2214 = vmatmul.f32.vlgmr.msrb.gmra.mxu1 %v2070_v15  ;;  %2259 = vmatmul.f32.vlgmr.msra.gmra.mxu3 %v2100_v16 }
 0x3f4   : > { %v1938_v51 = vpop.f32.mrf.mxu0 }
 0x3f5   : > { %v4217_v30 = vadd.f32 %v1938_v51, %v1826_v35  ;;  %v1844_v35 = vadd.f32 %v1843_v39, %v4449_v18 }
 0x3f7   : > { %v1849_v43 = vpop.f32.mrf.mxu3  ;;  %vm1994_vm12 = vcmp.gt.f32.partialorder %v4217_v30, 0.0 }
 0x3f8   : > { %v1850_v33 = vadd.f32 %v1849_v43, %v4447_v44  ;;  %v2131_v44 = vpop.permute.xlu2 %2130 }
 0x3f9   : > { %2217 = vmatmul.f32.gmra.mxu1 %v2072_v52 }
 0x3fc   : > { %v1941_v3 = vpop.f32.mrf.mxu0 }
 0x3fd   : > { %v4223_v11 = vadd.f32 %v1941_v3, %v1829_v60  ;;  %v4450_v60 = vld [vmem:[#allocation11_spill] sm:$0xff] }
 0x3fe   : > { %v1841_v3 = vadd.f32 %v1840_v45, %v4450_v60 }
 0x3ff   : > { %v1852_v0 = vpop.f32.mrf.mxu3  ;;  %vm1995_vm11 = vcmp.gt.f32.partialorder %v4223_v11, 0.0 }
 0x400   : > { %v1853_v5 = vadd.f32 %v1852_v0, %v4445_v59  ;;  %v2026_v0 = vmul.f32 0.01, %v4217_v30  ;;  %v2087_v59 = vld [vmem:[%s4430_s7 + $0x88] sm:$0xff] }
 0x401   : > { %2220 = vmatmul.f32.gmra.mxu1 %v2074_v10 }
 0x404   : > { %v1944_v61 = vpop.f32.mrf.mxu0 }
 0x405   : > { %v4229_v17 = vadd.f32 %v1944_v61, %v1832_v49 }
 0x407   : > { %v1855_v27 = vpop.f32.mrf.mxu3  ;;  %vm1996_vm10 = vcmp.gt.f32.partialorder %v4229_v17, 0.0 }
 0x408   : > { %v1856_v28 = vadd.f32 %v1855_v27, %v4444_v22  ;;  %v2022_v27 = vmul.f32 0.01, %v4170_v14  ;;  %v2083_v22 = vld [vmem:[%s4430_s7 + $0x68] sm:$0xff] }
 0x409   : > { %2223 = vmatmul.f32.gmra.mxu1 %v2076_v47 }
 0x40c   : > { %v1947_v13 = vpop.f32.mrf.mxu0 }
 0x40d   : > { %v4235_v7 = vadd.f32 %v1947_v13, %v1835_v25  ;;  %v2096_v13 = vld [vmem:[%s4430_s7 + $0xd0] sm:$0xff] }
 0x40f   : > { %v1858_v2 = vpop.f32.mrf.mxu3  ;;  %vm1997_vm9 = vcmp.gt.f32.partialorder %v4235_v7, 0.0 }
 0x410   : > { %v1859_v1 = vadd.f32 %v1858_v2, %v4446_v8  ;;  %v2081_v2 = vld [vmem:[%s4430_s7 + $0x58] sm:$0xff]  ;;  %v2091_v8 = vld [vmem:[%s4430_s7 + $0xa8] sm:$0xff] }
 0x411   : > { %2226 = vmatmul.f32.gmra.mxu1 %v2078_v38 }
 0x414   : > { %v1950_v62 = vpop.f32.mrf.mxu0 }
 0x415   : > { %v4241_v50 = vadd.f32 %v1950_v62, %v1838_v23 }
 0x417   : > { %vm1998_vm8 = vcmp.gt.f32.partialorder %v4241_v50, 0.0 }
 0x419   : > { %2229 = vmatmul.f32.gmra.mxu1 %v2080_v46  ;;  %v2030_v46 = vmul.f32 0.01, %v4241_v50 }
 0x41c   : > { %v1953_v54 = vpop.f32.mrf.mxu0 }
 0x41d   : > { %v1954_v61 = vadd.f32 %v1953_v54, %v1841_v3 }
 0x41f   : > { %v2031_v62 = vmul.f32 0.01, %v1954_v61  ;;  %vm1999_vm7 = vcmp.gt.f32.partialorder %v1954_v61, 0.0 }
 0x421   : > { %2232 = vmatmul.f32.gmra.mxu1 %v2082_v53  ;;  %v2063_v54 = vsel %vm1999_vm7, %v1954_v61, %v2031_v62  ;;  %v2029_v53 = vmul.f32 0.01, %v4235_v7 }
 0x423   : > { %v2061_v43 = vsel %vm1997_vm9, %v4235_v7, %v2029_v53  ;;  %v2058_v7 = vsel %vm1994_vm12, %v4217_v30, %v2026_v0 }
 0x424   : > { %v1956_v6 = vpop.f32.mrf.mxu0 }
 0x425   : > { %v1957_v10 = vadd.f32 %v1956_v6, %v1844_v35  ;;  %v2062_v6 = vsel %vm1998_vm8, %v4241_v50, %v2030_v46 }
 0x427   : > { %v2032_v23 = vmul.f32 0.01, %v1957_v10  ;;  %vm2000_vm6 = vcmp.gt.f32.partialorder %v1957_v10, 0.0 }
 0x429   : > { %2235 = vmatmul.f32.gmra.mxu1 %v2084_v4  ;;  %v2064_v39 = vsel %vm2000_vm6, %v1957_v10, %v2032_v23  ;;  %v2028_v4 = vmul.f32 0.01, %v4229_v17 }
 0x42c   : > { %v1959_v40 = vpop.f32.mrf.mxu0 }
 0x42d   : > { %v1960_v51 = vadd.f32 %v1959_v40, %v1847_v12  ;;  %v2027_v40 = vmul.f32 0.01, %v4223_v11  ;;  %v4352_v12 = vpop.permute.xlu2 %2145 }
 0x42f   : > { %v2033_v25 = vmul.f32 0.01, %v1960_v51  ;;  %vm2001_vm5 = vcmp.gt.f32.partialorder %v1960_v51, 0.0  ;;  %v2059_v50 = vsel %vm1995_vm11, %v4223_v11, %v2027_v40 }
 0x431   : > { %2238 = vmatmul.f32.gmra.mxu1 %v2086_v63  ;;  %v2065_v45 = vsel %vm2001_vm5, %v1960_v51, %v2033_v25  ;;  %v2060_v63 = vsel %vm1996_vm10, %v4229_v17, %v2028_v4 }
 0x434   : > { %v1962_v34 = vpop.f32.mrf.mxu0 }
 0x435   : > { %v1963_v48 = vadd.f32 %v1962_v34, %v1850_v33  ;;  %v2025_v34 = vmul.f32 0.01, %v4207_v19  ;;  %v2126_v33 = vpop.permute.xlu1 %2125  ;;  %v4361_v18 = vpop.permute.xlu2 %2160 }
 0x437   : > { %v2034_v49 = vmul.f32 0.01, %v1963_v48  ;;  %vm2002_vm4 = vcmp.gt.f32.partialorder %v1963_v48, 0.0  ;;  %v2057_v17 = vsel %vm1993_vm13, %v4207_v19, %v2025_v34  ;;  %v2071_v19 = vld [vmem:[%s4430_s7 + $0x8] sm:$0xff] }
 0x439   : > { %2241 = vmatmul.f32.gmra.mxu1 %v2088_v31  ;;  %v2066_v38 = vsel %vm2002_vm4, %v1963_v48, %v2034_v49  ;;  %v2024_v31 = vmul.f32 0.01, %v4202_v41 }
 0x43b   : > { %v2056_v11 = vsel %vm1992_vm14, %v4202_v41, %v2024_v31  ;;  %v2054_v41 = vsel %vm1990_vm0, %v4170_v14, %v2022_v27  ;;  %v2079_v14 = vld [vmem:[%s4430_s7 + $0x48] sm:$0xff] }
 0x43c   : > { %v1965_v9 = vpop.f32.mrf.mxu0 }
 0x43d   : > { %v1966_v21 = vadd.f32 %v1965_v9, %v1853_v5  ;;  %v2023_v9 = vmul.f32 0.01, %v4189_v26  ;;  %v2089_v5 = vld [vmem:[%s4430_s7 + $0x98] sm:$0xff] }
 0x43f   : > { %v2035_v42 = vmul.f32 0.01, %v1966_v21  ;;  %vm2003_vm3 = vcmp.gt.f32.partialorder %v1966_v21, 0.0  ;;  %v2055_v30 = vsel %vm1991_vm15, %v4189_v26, %v2023_v9  ;;  %v2073_v26 = vld [vmem:[%s4430_s7 + $0x18] sm:$0xff] }
 0x441   : > { %2244 = vmatmul.f32.gmra.mxu1 %v2090_v29  ;;  %v2067_v47 = vsel %vm2003_vm3, %v1966_v21, %v2035_v42  ;;  %v2101_v29 = vld [vmem:[%s4430_s7 + $0xf8] sm:$0xff]  ;;  %v4367_v42 = vpop.permute.xlu2 %2175 }
 0x444   : > { %v1968_v24 = vpop.f32.mrf.mxu0 }
 0x445   : > { %v1969_v36 = vadd.f32 %v1968_v24, %v1856_v28  ;;  %v2075_v24 = vld [vmem:[%s4430_s7 + $0x28] sm:$0xff]  ;;  %v2085_v28 = vld [vmem:[%s4430_s7 + $0x78] sm:$0xff] }
 0x447   : > { %v2036_v16 = vmul.f32 0.01, %v1969_v36  ;;  %vm2004_vm2 = vcmp.gt.f32.partialorder %v1969_v36, 0.0 }
 0x449   : > { %2247 = vmatmul.f32.gmra.mxu1 %v2092_v37  ;;  %v2068_v57 = vsel %vm2004_vm2, %v1969_v36, %v2036_v16  ;;  %v2077_v37 = vld [vmem:[%s4430_s7 + $0x38] sm:$0xff]  ;;  %v2121_v36 = vpop.permute.xlu0 %2120 }
 0x44c   : > { %v1971_v55 = vpop.f32.mrf.mxu0 }
 0x44d   : > { %v1972_v20 = vadd.f32 %v1971_v55, %v1859_v1  ;;  %v2093_v1 = vld [vmem:[%s4430_s7 + $0xb8] sm:$0xff]  ;;  %v2095_v55 = vld [vmem:[%s4430_s7 + $0xc8] sm:$0xff] }
 0x44f   : > { %vm2005_vm1 = vcmp.gt.f32.partialorder %v1972_v20, 0.0  ;;  %v2037_v15 = vmul.f32 0.01, %v1972_v20 }
 0x451   : > { %2250 = vmatmul.f32.gmra.mxu1 %v2094_v32  ;;  %v2069_v52 = vsel %vm2005_vm1, %v1972_v20, %v2037_v15  ;;  %v2097_v20 = vld [vmem:[%s4430_s7 + $0xd8] sm:$0xff]  ;;  %v2136_v58 = vpop.permute.xlu0 %2135  ;;  %v4354_v32 = vpop.permute.xlu1 %2140  ;;  %v2099_v15 = vld [vmem:[%s4430_s7 + $0xe8] sm:$0xff] }
 0x452   : > { %2263 = vmatpush.msrb.mxu2 %v2069_v52  ;;  %2642 = vmatpush.msrb.mxu3 %v2069_v52 }
 0x454   : > { %2264 = vmatpush.msrb.mxu2 %v2068_v57  ;;  %2643 = vmatpush.msrb.mxu3 %v2068_v57 }
 0x456   : > { %2265 = vmatpush.msrb.mxu2 %v2067_v47  ;;  %2644 = vmatpush.msrb.mxu3 %v2067_v47  ;;  %v4373_v47 = vpop.permute.xlu2 %2190 }
 0x458   : > { %2266 = vmatpush.msrb.mxu2 %v2066_v38  ;;  %2645 = vmatpush.msrb.mxu3 %v2066_v38 }
 0x459   : > { %2253 = vmatmul.f32.gmra.mxu1 %v2096_v13  ;;  %v4359_v16 = vpop.permute.xlu0 %2150  ;;  %v4363_v35 = vpop.permute.xlu1 %2155 }
 0x45a   : > { %2267 = vmatpush.msrb.mxu2 %v2065_v45  ;;  %2646 = vmatpush.msrb.mxu3 %v2065_v45 }
 0x45c   : > { %2268 = vmatpush.msrb.mxu2 %v2064_v39  ;;  %2647 = vmatpush.msrb.mxu3 %v2064_v39 }
 0x45e   : > { %2269 = vmatpush.msrb.mxu2 %v2063_v54  ;;  %2648 = vmatpush.msrb.mxu3 %v2063_v54  ;;  %v2400_v53 = vpop.permute.xlu2 %2399 }
 0x460   : > { %2270 = vmatpush.msrb.mxu2 %v2062_v6  ;;  %2649 = vmatpush.msrb.mxu3 %v2062_v6 }
 0x461   : > { %2256 = vmatmul.f32.gmra.mxu1 %v2098_v56  ;;  %v4365_v52 = vpop.permute.xlu0 %2165  ;;  %v4369_v60 = vpop.permute.xlu1 %2170 }
 0x462   : > { %2271 = vmatpush.msrb.mxu2 %v2061_v43  ;;  %2650 = vmatpush.msrb.mxu3 %v2061_v43 }
 0x464   : > { %2272 = vmatpush.msrb.mxu2 %v2060_v63  ;;  %2651 = vmatpush.msrb.mxu3 %v2060_v63 }
 0x466   : > { %2273 = vmatpush.msrb.mxu2 %v2059_v50  ;;  %2652 = vmatpush.msrb.mxu3 %v2059_v50 }
 0x468   : > { %2274 = vmatpush.msrb.mxu2 %v2058_v7  ;;  %2653 = vmatpush.msrb.mxu3 %v2058_v7 }
 0x469   : > { %v4371_v49 = vpop.permute.xlu0 %2180  ;;  %v4375_v25 = vpop.permute.xlu1 %2185 }
 0x46a   : > { %2275 = vmatpush.msrb.mxu2 %v2057_v17  ;;  %2654 = vmatpush.msrb.mxu3 %v2057_v17 }
 0x46c   : > { %2276 = vmatpush.msrb.mxu2 %v2056_v11  ;;  %2655 = vmatpush.msrb.mxu3 %v2056_v11 }
 0x46e   : > { %2277 = vmatpush.msrb.mxu2 %v2055_v30  ;;  %2656 = vmatpush.msrb.mxu3 %v2055_v30  ;;  %v2215_v21 = vpop.f32.mrf.mxu1 }
 0x46f   : > { %v2216_v10 = vadd.f32 %v2215_v21, %v2121_v36 }
 0x470   : > { %2278 = vmatpush.msrb.mxu2 %v2054_v41  ;;  %2657 = vmatpush.msrb.mxu3 %v2054_v41 }
 0x471   : > { %2279 = vmatmul.f32.vlgmr.msrb.gmra.mxu2 %v2071_v19  ;;  %2324 = vmatmul.f32.vlgmr.msrb.gmra.mxu3 %v2101_v29  ;;  %v4377_v39 = vpop.permute.xlu0 %2195  ;;  %v2395_v56 = vpop.permute.xlu1 %2394 }
 0x476   : > { %v2218_v48 = vpop.f32.mrf.mxu1 }
 0x477   : > { %v2219_v13 = vadd.f32 %v2218_v48, %v2126_v33 }
 0x479   : > { %2282 = vmatmul.f32.gmra.mxu2 %v2073_v26  ;;  %v2405_v31 = vpop.permute.xlu0 %2404  ;;  %v2410_v26 = vpop.permute.xlu1 %2409 }
 0x47e   : > { %v2221_v51 = vpop.f32.mrf.mxu1 }
 0x47f   : > { %v2222_v40 = vadd.f32 %v2221_v51, %v2131_v44 }
 0x481   : > { %2285 = vmatmul.f32.gmra.mxu2 %v2075_v24  ;;  %v2420_v51 = vpop.permute.xlu0 %2419 }
 0x486   : > { %v2224_v3 = vpop.f32.mrf.mxu1 }
 0x487   : > { %v2225_v11 = vadd.f32 %v2224_v3, %v2136_v58 }
 0x489   : > { %2288 = vmatmul.f32.gmra.mxu2 %v2077_v37 }
 0x48e   : > { %v2227_v23 = vpop.f32.mrf.mxu1 }
 0x48f   : > { %v2228_v58 = vadd.f32 %v2227_v23, %v4354_v32 }
 0x491   : > { %2291 = vmatmul.f32.gmra.mxu2 %v2079_v14 }
 0x496   : > { %v2230_v34 = vpop.f32.mrf.mxu1 }
 0x497   : > { %v2231_v48 = vadd.f32 %v2230_v34, %v4352_v12 }
 0x499   : > { %2294 = vmatmul.f32.gmra.mxu2 %v2081_v2 }
 0x49e   : > { %v2233_v41 = vpop.f32.mrf.mxu1 }
 0x49f   : > { %v2234_v3 = vadd.f32 %v2233_v41, %v4359_v16 }
 0x4a1   : > { %2297 = vmatmul.f32.gmra.mxu2 %v2083_v22 }
 0x4a6   : > { %v2236_v22 = vpop.f32.mrf.mxu1 }
 0x4a9   : > { %2300 = vmatmul.f32.gmra.mxu2 %v2085_v28 }
 0x4b1   : > { %2303 = vmatmul.f32.gmra.mxu2 %v2087_v59  ;;  %v2239_v59 = vpop.f32.mrf.mxu1 }
 0x4b9   : > { %2306 = vmatmul.f32.gmra.mxu2 %v2089_v5 }
 0x4c1   : > { %2309 = vmatmul.f32.gmra.mxu2 %v2091_v8 }
 0x4c9   : > { %2312 = vmatmul.f32.gmra.mxu2 %v2093_v1  ;;  %v2242_v1 = vpop.f32.mrf.mxu1 }
 0x4ca   : > { %v2243_v12 = vadd.f32 %v2242_v1, %v4365_v52 }
 0x4d1   : > { %2315 = vmatmul.f32.gmra.mxu2 %v2095_v55  ;;  %v2245_v55 = vpop.f32.mrf.mxu1 }
 0x4d9   : > { %2318 = vmatmul.f32.gmra.mxu2 %v2097_v20  ;;  %v2248_v33 = vpop.f32.mrf.mxu1  ;;  %v2415_v20 = vpop.permute.xlu2 %2414 }
 0x4e1   : > { %2321 = vmatmul.f32.gmra.mxu2 %v2099_v15  ;;  %v2430_v32 = vpop.permute.xlu2 %2429 }
 0x4f4   : > { %v2280_v57 = vpop.f32.mrf.mxu2 }
 0x4f5   : > { %v2281_v61 = vadd.f32 %v2280_v57, %v2216_v10  ;;  %v2251_v57 = vpop.f32.mrf.mxu1 }
 0x4f7   : > { %v2344_v38 = vmul.f32 0.01, %v2281_v61  ;;  %vm2328_vm1 = vcmp.gt.f32.partialorder %v2281_v61, 0.0 }
 0x4f9   : > { %v2360_v46 = vsel %vm2328_vm1, %v2281_v61, %v2344_v38  ;;  %v2237_v38 = vadd.f32 %v2236_v22, %v4363_v35 }
 0x4fa   : > { %v2472_v4 = vmul.f32 %v2395_v56, %v2360_v46  ;;  %v2240_v46 = vadd.f32 %v2239_v59, %v4361_v18  ;;  %v2249_v18 = vadd.f32 %v2248_v33, %v4367_v42 }
 0x4fc   : > { %v2283_v45 = vpop.f32.mrf.mxu2 }
 0x4fd   : > { %v2284_v62 = vadd.f32 %v2283_v45, %v2219_v13  ;;  %v2425_v13 = vpop.permute.xlu1 %2424  ;;  %v2254_v52 = vpop.f32.mrf.mxu1 }
 0x4fe   : > { %v2255_v22 = vadd.f32 %v2254_v52, %v4375_v25 }
 0x4ff   : > { %vm2329_vm2 = vcmp.gt.f32.partialorder %v2284_v62, 0.0  ;;  %v2345_v54 = vmul.f32 0.01, %v2284_v62 }
 0x501   : > { %v2361_v6 = vsel %vm2329_vm2, %v2284_v62, %v2345_v54 }
 0x502   : > { %v2473_v43 = vmul.f32 %v2400_v53, %v2361_v6  ;;  %v2246_v6 = vadd.f32 %v2245_v55, %v4369_v60 }
 0x504   : > { %v2488_v63 = vadd.f32 %v2473_v43, %v2472_v4  ;;  %v2286_v0 = vpop.f32.mrf.mxu2 }
 0x505   : > { %v2287_v50 = vadd.f32 %v2286_v0, %v2222_v40  ;;  %v2435_v0 = vpop.permute.xlu0 %2434 }
 0x507   : > { %vm2330_vm3 = vcmp.gt.f32.partialorder %v2287_v50, 0.0  ;;  %v2346_v7 = vmul.f32 0.01, %v2287_v50 }
 0x509   : > { %v2362_v17 = vsel %vm2330_vm3, %v2287_v50, %v2346_v7 }
 0x50a   : > { %v2474_v9 = vmul.f32 %v2405_v31, %v2362_v17  ;;  %v2260_v31 = vpop.f32.mrf.mxu3 }
 0x50c   : > { %v2489_v27 = vadd.f32 %v2488_v63, %v2474_v9  ;;  %v2289_v30 = vpop.f32.mrf.mxu2  ;;  %v2440_v9 = vpop.permute.xlu1 %2439 }
 0x50d   : > { %v2290_v19 = vadd.f32 %v2289_v30, %v2225_v11  ;;  %v2252_v11 = vadd.f32 %v2251_v57, %v4371_v49 }
 0x50f   : > { %vm2331_vm4 = vcmp.gt.f32.partialorder %v2290_v19, 0.0  ;;  %v2347_v29 = vmul.f32 0.01, %v2290_v19 }
 0x511   : > { %v2363_v24 = vsel %vm2331_vm4, %v2290_v19, %v2347_v29 }
 0x512   : > { %v2475_v37 = vmul.f32 %v2410_v26, %v2363_v24  ;;  %v2325_v55 = vpop.f32.mrf.mxu3 }
 0x514   : > { %v2490_v14 = vadd.f32 %v2489_v27, %v2475_v37  ;;  %v2292_v2 = vpop.f32.mrf.mxu2 }
 0x515   : > { %v2293_v15 = vadd.f32 %v2292_v2, %v2228_v58  ;;  %v2445_v2 = vpop.permute.xlu2 %2444 }
 0x517   : > { %v2348_v45 = vmul.f32 0.01, %v2293_v15  ;;  %vm2332_vm5 = vcmp.gt.f32.partialorder %v2293_v15, 0.0 }
 0x519   : > { %v2364_v23 = vsel %vm2332_vm5, %v2293_v15, %v2348_v45  ;;  %v2257_v15 = vpop.f32.mrf.mxu1 }
 0x51a   : > { %v2476_v40 = vmul.f32 %v2415_v20, %v2364_v23  ;;  %v2261_v20 = vadd.f32 %v2260_v31, %v4377_v39 }
 0x51c   : > { %v2295_v28 = vpop.f32.mrf.mxu2  ;;  %v2491_v19 = vadd.f32 %v2490_v14, %v2476_v40 }
 0x51d   : > { %v2296_v10 = vadd.f32 %v2295_v28, %v2231_v48 }
 0x51f   : > { %v2349_v54 = vmul.f32 0.01, %v2296_v10  ;;  %vm2333_vm6 = vcmp.gt.f32.partialorder %v2296_v10, 0.0 }
 0x521   : > { %v2365_v4 = vsel %vm2333_vm6, %v2296_v10, %v2349_v54  ;;  %v2326_v10 = vadd.f32 %v2325_v55, %v2261_v20 }
 0x522   : > { %v2477_v17 = vmul.f32 %v2420_v51, %v2365_v4 }
 0x523   : > { %vm2343_vm15 = vcmp.gt.f32.partialorder %v2326_v10, 0.0 }
 0x524   : > { %v2298_v5 = vpop.f32.mrf.mxu2  ;;  %v2492_v42 = vadd.f32 %v2491_v19, %v2477_v17 }
 0x525   : > { %v2299_v62 = vadd.f32 %v2298_v5, %v2234_v3  ;;  %v2455_v3 = vpop.permute.xlu1 %2454 }
 0x527   : > { %v2350_v56 = vmul.f32 0.01, %v2299_v62  ;;  %vm2334_vm7 = vcmp.gt.f32.partialorder %v2299_v62, 0.0 }
 0x529   : > { %v2366_v50 = vsel %vm2334_vm7, %v2299_v62, %v2350_v56 }
 0x52a   : > { %v2478_v29 = vmul.f32 %v2425_v13, %v2366_v50 }
 0x52c   : > { %v2301_v8 = vpop.f32.mrf.mxu2  ;;  %v2493_v5 = vadd.f32 %v2492_v42, %v2478_v29 }
 0x52d   : > { %v2302_v53 = vadd.f32 %v2301_v8, %v2237_v38  ;;  %v2258_v38 = vadd.f32 %v2257_v15, %v4373_v47  ;;  %v2470_v40 = vpop.permute.xlu1 %2469 }
 0x52f   : > { %v2351_v43 = vmul.f32 0.01, %v2302_v53  ;;  %vm2335_vm8 = vcmp.gt.f32.partialorder %v2302_v53, 0.0 }
 0x531   : > { %v2367_v60 = vsel %vm2335_vm8, %v2302_v53, %v2351_v43  ;;  %v2460_v53 = vpop.permute.xlu2 %2459 }
 0x532   : > { %v2479_v37 = vmul.f32 %v2430_v32, %v2367_v60  ;;  %v2359_v32 = vmul.f32 0.01, %v2326_v10 }
 0x534   : > { %v2304_v36 = vpop.f32.mrf.mxu2  ;;  %v2375_v4 = vsel %vm2343_vm15, %v2326_v10, %v2359_v32 }
 0x535   : > { %v2305_v16 = vadd.f32 %v2304_v36, %v2240_v46 }
 0x537   : > { %v2352_v34 = vmul.f32 0.01, %v2305_v16  ;;  %vm2336_vm9 = vcmp.gt.f32.partialorder %v2305_v16, 0.0 }
 0x539   : > { %v2368_v41 = vsel %vm2336_vm9, %v2305_v16, %v2352_v34  ;;  %v2513_v52 = vpop.permute.xlu2 %2512 }
 0x53a   : > { %v2480_v8 = vmul.f32 %v2435_v0, %v2368_v41 }
 0x53c   : > { %v2307_v44 = vpop.f32.mrf.mxu2 }
 0x53d   : > { %v2308_v35 = vadd.f32 %v2307_v44, %v2243_v12  ;;  %v2494_v44 = vadd.f32 %v2493_v5, %v2479_v37 }
 0x53f   : > { %v2353_v27 = vmul.f32 0.01, %v2308_v35  ;;  %vm2337_vm10 = vcmp.gt.f32.partialorder %v2308_v35, 0.0  ;;  %v2495_v25 = vadd.f32 %v2494_v44, %v2480_v8 }
 0x541   : > { %v2369_v28 = vsel %vm2337_vm10, %v2308_v35, %v2353_v27 }
 0x542   : > { %v2481_v33 = vmul.f32 %v2440_v9, %v2369_v28  ;;  %v2515_v9 = vperm.slane %v2513_v52, 0 }
 0x544   : > { %v2310_v21 = vpop.f32.mrf.mxu2 }
 0x545   : > { %v2311_v7 = vadd.f32 %v2310_v21, %v2246_v6  ;;  %v2450_v21 = vpop.permute.xlu0 %2449 }
 0x547   : > { %v2354_v26 = vmul.f32 0.01, %v2311_v7  ;;  %vm2338_vm11 = vcmp.gt.f32.partialorder %v2311_v7, 0.0 }
 0x549   : > { %v2370_v1 = vsel %vm2338_vm11, %v2311_v7, %v2354_v26 }
 0x54a   : > { %v2482_v51 = vmul.f32 %v2445_v2, %v2370_v1 }
 0x54c   : > { %v2313_v61 = vpop.f32.mrf.mxu2 }
 0x54d   : > { %v2314_v30 = vadd.f32 %v2313_v61, %v2249_v18  ;;  %v2496_v61 = vadd.f32 %v2495_v25, %v2481_v33  ;;  %v2465_v6 = vpop.permute.xlu0 %2464 }
 0x54f   : > { %v2355_v59 = vmul.f32 0.01, %v2314_v30  ;;  %vm2339_vm12 = vcmp.gt.f32.partialorder %v2314_v30, 0.0  ;;  %v2497_v62 = vadd.f32 %v2496_v61, %v2482_v51 }
 0x551   : > { %v2371_v58 = vsel %vm2339_vm12, %v2314_v30, %v2355_v59 }
 0x552   : > { %v2483_v13 = vmul.f32 %v2450_v21, %v2371_v58 }
 0x554   : > { %v2316_v63 = vpop.f32.mrf.mxu2  ;;  %v2498_v12 = vadd.f32 %v2497_v62, %v2483_v13 }
 0x555   : > { %v2317_v24 = vadd.f32 %v2316_v63, %v2252_v11  ;;  %v2487_v63 = vmul.f32 %v2470_v40, %v2375_v4 }
 0x557   : > { %v2356_v36 = vmul.f32 0.01, %v2317_v24  ;;  %vm2340_vm13 = vcmp.gt.f32.partialorder %v2317_v24, 0.0 }
 0x559   : > { %v2372_v57 = vsel %vm2340_vm13, %v2317_v24, %v2356_v36 }
 0x55a   : > { %v2484_v46 = vmul.f32 %v2455_v3, %v2372_v57 }
 0x55c   : > { %v2319_v49 = vpop.f32.mrf.mxu2  ;;  %v2499_v16 = vadd.f32 %v2498_v12, %v2484_v46 }
 0x55d   : > { %v2320_v14 = vadd.f32 %v2319_v49, %v2255_v22 }
 0x55f   : > { %v2357_v48 = vmul.f32 0.01, %v2320_v14  ;;  %vm2341_vm14 = vcmp.gt.f32.partialorder %v2320_v14, 0.0 }
 0x561   : > { %v2373_v45 = vsel %vm2341_vm14, %v2320_v14, %v2357_v48 }
 0x562   : > { %v2485_v23 = vmul.f32 %v2460_v53, %v2373_v45 }
 0x564   : > { %v2322_v54 = vpop.f32.mrf.mxu2  ;;  %v2500_v35 = vadd.f32 %v2499_v16, %v2485_v23 }
 0x565   : > { %v2323_v39 = vadd.f32 %v2322_v54, %v2258_v38 }
 0x567   : > { %vm2342_vm0 = vcmp.gt.f32.partialorder %v2323_v39, 0.0  ;;  %v2358_v56 = vmul.f32 0.01, %v2323_v39 }
 0x569   : > { %v2374_v43 = vsel %vm2342_vm0, %v2323_v39, %v2358_v56 }
 0x56a   : > { %v2486_v47 = vmul.f32 %v2465_v6, %v2374_v43 }
 0x56c   : > { %v2501_v0 = vadd.f32 %v2500_v35, %v2486_v47 }
 0x56e   : > { %v2502_v18 = vadd.f32 %v2501_v0, %v2487_v63 }
 0x570   : > { %v2503_v50 = vrot.slane %v2502_v18, 4 }
 0x572   : > { %v2504_v34 = vadd.f32 %v2503_v50, %v2502_v18 }
 0x574   : > { %v2505_v7 = vrot.slane %v2504_v34, 2 }
 0x576   : > { %v2506_v31 = vadd.f32 %v2505_v7, %v2504_v34 }
 0x578   : > { %v2507_v17 = vrot.slane %v2506_v31, 1 }
 0x57a   : > { %v2508_v11 = vadd.f32 %v2507_v17, %v2506_v31 }
 0x57c   : > { %v2516_v60 = vadd.f32 %v2515_v9, %v2508_v11 }
 0x57e   : > { %2517 = vst [vmem:[%s378_s30] sm:$0x1] %v2516_v60 }
 0x57f   : > { %2728 = shalt.err (!%p2725_p3)
}
 0x580   : > { %2658 = dma.vmem_to_hbm [thread:$0]  (%p2867_p5), %s2530_s12, 16, %s2532_s13, %s2519_s14  }
 0x581 PF: > { %p2664_p4 = scmp.ge.s32.totalorder %s2763_s22, 2  ;;  %s2543_s18 = sand.u32 1, %s2751_s19  }
 0x582   : > { %s2544_s30 = scalar_lea.sflag [#allocation4], %s2543_s18 }
 0x583   : > { %p2661_p7 = pnand %p2664_p4, %p2871_p6 }
 0x585   : > { %p2662_p8 = pneg %p2661_p7 }
 0x587   : > { %2746 = dma.done.wait (%p2662_p8), %s2544_s30, 16  }
 0x588   : > { %2748 = vsyncadd (%p2662_p8), %s2544_s30, 4294967280  ;;  %p23_p9 = scmp.ge.s32.totalorder %s2854_s24, 4   ;;  %s4451_s19 = smov %s2755_s20 }
 0x589   : > { %s4452_s20 = smov %s2759_s21  ;;  %s4453_s21 = smov %s2865_s27 }
 0x58a   : > { %s4454_s22 = smov %s2854_s24  ;;  %25 = sbr.rel (!%p23_p9) target bundleno = 6 (0x6), region = 99 }
 0x58f   :  { %2549 = vsyncpa [#allocation4], 1 }
 0x590   :  { %2551 = vsyncpa [#allocation4 + $0x1], 1 }

</bundles_post_ra>
